<compile_context>
chip_gen: v6e
topology: v6e:2x2x1
jax: 0.10.0
libtpu: 0.0.40
codegen_flags: <defaults>
</compile_context>

<pallas_src>
import functools

import jax
import jax.numpy as jnp
from jax import lax
from jax.experimental import pallas as pl
from jax.experimental.pallas import tpu as pltpu

_LANE = 128


def _round_up(x: int, m: int) -> int:
    return ((x + m - 1) // m) * m


# --------------------------------------------------------------------------------------
# Kernel
# --------------------------------------------------------------------------------------
def _gru_kernel(h0_ref, x_ref, w_ih_ref, w_hh_ref, b_gx_ref, b_hn_ref,
                out_ref, gx_ref, h_ref):
    """One (batch_tile x seq_block) block of a single-layer GRU (PyTorch gate order r,z,n).

    h0_ref : (TB, Hp)        initial hidden state for this batch tile, f32
    x_ref  : (SB, TB, Ep)    embedded inputs for this block (seq-major), bf16
    w_ih_ref: (Ep, 3Hp)      W_ih^T, columns [r|z|n], bf16
    w_hh_ref: (Hp, 3Hp)      W_hh^T, columns [r|z|n], bf16
    b_gx_ref: (1, 3Hp)       [b_ir+b_hr | b_iz+b_hz | b_in], f32
    b_hn_ref: (1, Hp)        b_hh_n, f32
    out_ref: (SB, TB, Hp)    hidden states for this block, bf16
    gx_ref : (SB, TB, 3Hp)   VMEM scratch for the block's input projection, f32
    h_ref  : (TB, Hp)        VMEM scratch carrying h across sequence blocks, f32
    """
    SB, TB, Ep = x_ref.shape
    Hp = w_hh_ref.shape[0]

    # (Re)load the carried hidden state at the start of every sequence.
    @pl.when(pl.program_id(1) == 0)
    def _():
        h_ref[...] = h0_ref[...]

    # ---- Input projection for the whole SB-step block: one MXU pass, staged in VMEM. ----
    x2d = x_ref[...].reshape(SB * TB, Ep)                               # bf16, free reshape
    gx = jnp.dot(x2d, w_ih_ref[...], preferred_element_type=jnp.float32)
    gx_ref[...] = (gx + b_gx_ref[...]).reshape(SB, TB, 3 * Hp)

    w_hh = w_hh_ref[...]
    b_hn = b_hn_ref[...]

    # ---- Recurrence: one merged (TB,Hp)x(Hp,3Hp) dot per step, fully unrolled fori_loop. ----
    def step(t, h):
        gh = jnp.dot(h.astype(jnp.bfloat16), w_hh,
                     preferred_element_type=jnp.float32)                # (TB, 3Hp)
        gx_t = gx_ref[t]                                                # (TB, 3Hp)
        rz = jax.nn.sigmoid(gx_t[:, :2 * Hp] + gh[:, :2 * Hp])          # one EUP slab for r,z
        r = rz[:, :Hp]
        z = rz[:, Hp:]
        n = jnp.tanh(gx_t[:, 2 * Hp:] + r * (gh[:, 2 * Hp:] + b_hn))
        h_new = (1.0 - z) * n + z * h
        out_ref[t] = h_new.astype(out_ref.dtype)                        # dense (TB,Hp) store
        return h_new

    h_ref[...] = lax.fori_loop(0, SB, step, h_ref[...], unroll=True)


# --------------------------------------------------------------------------------------
# Host-side wrapper (mirrors EncoderRNN.forward, num_layers=1)
# --------------------------------------------------------------------------------------
def encoder_rnn_forward(tokens, params, hidden=None, *, hidden_dim,
                        batch_tile=256, seq_block=32, out_dtype=jnp.bfloat16):
    """Returns (output (B,S,H) f32, hidden (1,B,H) f32) like the PyTorch module.

    batch_tile: target MXU M per step (128 on v5e is enough; 256 fills v6e/v7x).
    seq_block : recurrence steps per grid iteration (amortizes ~600-cycle grid overhead).
    """
    emb = params["embedding"]        # (V, Ep) bf16, lane-padded
    w_ih = params["w_ih"]            # (Ep, 3Hp) bf16
    w_hh = params["w_hh"]            # (Hp, 3Hp) bf16
    b_gx = params["b_gx"]            # (1, 3Hp) f32
    b_hn = params["b_hn"]            # (1, Hp) f32

    B, S = tokens.shape
    assert S >= 1, "EncoderRNN kernel requires at least one timestep"
    H = hidden_dim
    Ep = emb.shape[1]
    Hp = w_hh.shape[0]

    # Batch tiling: pad to multiples of 16 (bf16 sublane packing), cap the tile at the batch,
    # and keep >=2 tiles when that still leaves >=128 rows per tile (v7x megacore sharding).
    B16 = _round_up(B, 16)
    TB = min(batch_tile, B16)
    if B16 // TB < 2 and B16 >= 256 and B16 % 256 == 0:
        TB = B16 // 2
    B_pad = _round_up(B16, TB)

    SB = min(seq_block, _round_up(S, 8))
    S_pad = _round_up(S, SB)

    # Embedding gather, sequence-major, already bf16 (halves the HBM->VMEM x stream).
    # TODO(synk): fuse the gather into the kernel (scalar-prefetched token ids + per-row DMA
    # from the HBM table) to avoid materializing the (S_pad, B_pad, Ep) activation in HBM.
    # TODO(synk): num_layers > 1 would require stacking this kernel once per layer.
    tokens_p = jnp.pad(tokens, ((0, B_pad - B), (0, S_pad - S)))
    x = jnp.take(emb, tokens_p.T, axis=0)                 # (S_pad, B_pad, Ep) bf16

    if hidden is None:
        h0 = jnp.zeros((B_pad, Hp), jnp.float32)
    else:
        h0 = jnp.pad(hidden[0].astype(jnp.float32), ((0, B_pad - B), (0, Hp - H)))

    grid = (B_pad // TB, S_pad // SB)

    # Exact VMEM budget (double-buffered blocks + weights + scratch) + 2 MiB headroom,
    # floored at the 32 MiB default scoped limit.
    out_isz = jnp.dtype(out_dtype).itemsize
    vmem_bytes = (2 * SB * TB * Ep * 2              # x blocks (bf16, double-buffered)
                  + 2 * SB * TB * Hp * out_isz      # out blocks
                  + 2 * TB * Hp * 4                 # h0 blocks
                  + 2 * (Ep + Hp) * 3 * Hp * 2      # weights (bf16)
                  + 2 * 4 * Hp * 4                  # biases
                  + SB * TB * 3 * Hp * 4            # gx scratch (f32)
                  + TB * Hp * 4)                    # h scratch (f32)
    vmem_limit = int(min(max(vmem_bytes + (2 << 20), 32 << 20), 128 << 20))

    out_sm = pl.pallas_call(
        _gru_kernel,
        out_shape=jax.ShapeDtypeStruct((S_pad, B_pad, Hp), out_dtype),
        grid_spec=pltpu.PrefetchScalarGridSpec(
            num_scalar_prefetch=0,
            grid=grid,
            in_specs=[
                pl.BlockSpec((TB, Hp), lambda b, s: (b, 0)),          # h0
                pl.BlockSpec((SB, TB, Ep), lambda b, s: (s, b, 0)),   # x (seq-major, bf16)
                pl.BlockSpec(w_ih.shape, lambda b, s: (0, 0)),        # W_ih^T [r|z|n]
                pl.BlockSpec(w_hh.shape, lambda b, s: (0, 0)),        # W_hh^T [r|z|n]
                pl.BlockSpec(b_gx.shape, lambda b, s: (0, 0)),        # folded input bias
                pl.BlockSpec(b_hn.shape, lambda b, s: (0, 0)),        # b_hh_n
            ],
            out_specs=pl.BlockSpec((SB, TB, Hp), lambda b, s: (s, b, 0)),
            scratch_shapes=[
                pltpu.VMEM((SB, TB, 3 * Hp), jnp.float32),            # staged gx
                pltpu.VMEM((TB, Hp), jnp.float32),                    # carried h
            ],
        ),
        compiler_params=pltpu.CompilerParams(
            dimension_semantics=("parallel", "arbitrary"),
            vmem_limit_bytes=vmem_limit,
        ),
    )(h0, x, w_ih, w_hh, b_gx, b_hn)

    # Back to batch_first, drop padding.  The swapaxes now reads the half-width bf16 array.
    output = jnp.swapaxes(out_sm[:S, :B, :H], 0, 1).astype(jnp.float32)   # (B, S, H)
    h_n = out_sm[S - 1, :B, :H].astype(jnp.float32)[None]                 # (1, B, H)
    return output, h_n


# --------------------------------------------------------------------------------------
# Parameter construction (PyTorch layout -> kernel layout)
# --------------------------------------------------------------------------------------
def init_torch_params(key, vocab_dim, emb_dim, hidden_dim):
    """Deterministic synthetic init matching nn.Embedding / nn.GRU shapes (PyTorch layout)."""
    k_emb, k_wih, k_whh, k_bih, k_bhh = jax.random.split(key, 5)
    bound = 1.0 / float(hidden_dim) ** 0.5
    return {
        "embedding": jax.random.normal(k_emb, (vocab_dim, emb_dim), dtype=jnp.float32),
        "w_ih": jax.random.uniform(k_wih, (3 * hidden_dim, emb_dim),
                                   minval=-bound, maxval=bound, dtype=jnp.float32),
        "w_hh": jax.random.uniform(k_whh, (3 * hidden_dim, hidden_dim),
                                   minval=-bound, maxval=bound, dtype=jnp.float32),
        "b_ih": jax.random.uniform(k_bih, (3 * hidden_dim,),
                                   minval=-bound, maxval=bound, dtype=jnp.float32),
        "b_hh": jax.random.uniform(k_bhh, (3 * hidden_dim,),
                                   minval=-bound, maxval=bound, dtype=jnp.float32),
    }


def pack_params(tp, mxu_dtype=jnp.bfloat16, lane=_LANE):
    """Lane-pad E/H to 128 multiples, merge the 3 gate weights, fold r/z biases, cast to bf16."""
    V, E = tp["embedding"].shape
    H = tp["w_hh"].shape[1]
    Ep = _round_up(E, lane)
    Hp = _round_up(H, lane)

    def pack_w(w_t, rows, rows_p):
        # w_t: (rows, 3H), columns grouped [r|z|n]; pad each gate to Hp cols, rows to rows_p.
        gates = [jnp.pad(w_t[:, i * H:(i + 1) * H], ((0, rows_p - rows), (0, Hp - H)))
                 for i in range(3)]
        return jnp.concatenate(gates, axis=1)                           # (rows_p, 3Hp)

    w_ih = pack_w(tp["w_ih"].T, E, Ep).astype(mxu_dtype)                # (Ep, 3Hp)
    w_hh = pack_w(tp["w_hh"].T, H, Hp).astype(mxu_dtype)                # (Hp, 3Hp)

    def pad_b(b):
        return jnp.pad(b, (0, Hp - H))

    b_ir, b_iz, b_in = (tp["b_ih"][i * H:(i + 1) * H] for i in range(3))
    b_hr, b_hz, b_hn = (tp["b_hh"][i * H:(i + 1) * H] for i in range(3))
    b_gx = jnp.concatenate([pad_b(b_ir + b_hr), pad_b(b_iz + b_hz), pad_b(b_in)])

    return {
        "embedding": jnp.pad(tp["embedding"], ((0, 0), (0, Ep - E))).astype(mxu_dtype),
        "w_ih": w_ih,
        "w_hh": w_hh,
        "b_gx": b_gx.reshape(1, 3 * Hp).astype(jnp.float32),
        "b_hn": pad_b(b_hn).reshape(1, Hp).astype(jnp.float32),
    }


# --------------------------------------------------------------------------------------
# Pure-JAX reference (PyTorch GRU semantics) for correctness checks
# --------------------------------------------------------------------------------------
def _reference_forward(tokens, tp, hidden=None, mxu_dtype=jnp.float32):
    emb = jnp.take(tp["embedding"], tokens, axis=0)       # (B, S, E) f32
    B, S, _ = emb.shape
    H = tp["w_hh"].shape[1]
    w_ih_t = tp["w_ih"].T.astype(mxu_dtype)
    w_hh_t = tp["w_hh"].T.astype(mxu_dtype)
    b_ih, b_hh = tp["b_ih"], tp["b_hh"]
    h = jnp.zeros((B, H), jnp.float32) if hidden is None else hidden[0]

    def step(h, x_t):
        gx = jnp.dot(x_t.astype(mxu_dtype), w_ih_t, preferred_element_type=jnp.float32) + b_ih
        gh = jnp.dot(h.astype(mxu_dtype), w_hh_t, preferred_element_type=jnp.float32) + b_hh
        r = jax.nn.sigmoid(gx[:, :H] + gh[:, :H])
        z = jax.nn.sigmoid(gx[:, H:2 * H] + gh[:, H:2 * H])
        n = jnp.tanh(gx[:, 2 * H:] + r * gh[:, 2 * H:])
        h_new = (1.0 - z) * n + z * h
        return h_new, h_new

    h_n, outs = lax.scan(step, h, jnp.swapaxes(emb, 0, 1))
    return jnp.swapaxes(outs, 0, 1), h_n[None]


# --------------------------------------------------------------------------------------
if __name__ == "__main__":
    vocab_dim, emb_dim, hidden_dim = 20, 16, 32
    batch, seq = 2, 8

    key = jax.random.PRNGKey(0)
    k_params, k_tokens = jax.random.split(key)

    torch_params = init_torch_params(k_params, vocab_dim, emb_dim, hidden_dim)
    kernel_params = pack_params(torch_params, mxu_dtype=jnp.bfloat16)

    tokens = jax.random.randint(k_tokens, (batch, seq), 0, vocab_dim, dtype=jnp.int32)

    fwd = jax.jit(functools.partial(encoder_rnn_forward, hidden_dim=hidden_dim))
    output, h_n = fwd(tokens, kernel_params)
    jax.block_until_ready((output, h_n))

    assert output.shape == (batch, seq, hidden_dim)
    assert h_n.shape == (1, batch, hidden_dim)

    # Check against a reference that mirrors the kernel's bf16 MXU operands (the kernel
    # additionally stores the output in bf16, hence the ~1e-2 tolerance).
    ref_out_bf, ref_h_bf = _reference_forward(tokens, torch_params, mxu_dtype=jnp.bfloat16)
    assert jnp.allclose(output, ref_out_bf, rtol=1e-2, atol=1e-2)
    assert jnp.allclose(h_n, ref_h_bf, rtol=1e-2, atol=1e-2)

    # Loose sanity check against the pure-f32 PyTorch-semantics reference.
    ref_out, ref_h = _reference_forward(tokens, torch_params, mxu_dtype=jnp.float32)
    assert jnp.allclose(output, ref_out, rtol=5e-2, atol=5e-2)
    assert jnp.allclose(h_n, ref_h, rtol=5e-2, atol=5e-2)

    print("KERNEL_OK")
</pallas_src>

<mosaic_0001>
module attributes {stable_mosaic.version = 11 : i64} {
  func.func @_gru_kernel(%arg0: i32, %arg1: i32, %arg2: memref<16x128xf32, #tpu.memory_space<vmem>>, %arg3: memref<8x16x128xbf16, #tpu.memory_space<vmem>>, %arg4: memref<128x384xbf16, #tpu.memory_space<vmem>>, %arg5: memref<128x384xbf16, #tpu.memory_space<vmem>>, %arg6: memref<1x384xf32, #tpu.memory_space<vmem>>, %arg7: memref<1x128xf32, #tpu.memory_space<vmem>>, %arg8: memref<8x16x128xbf16, #tpu.memory_space<vmem>>, %arg9: memref<8x16x384xf32, #tpu.memory_space<vmem>>, %arg10: memref<16x128xf32, #tpu.memory_space<vmem>>) attributes {dimension_semantics = [#tpu.dimension_semantics<parallel>, #tpu.dimension_semantics<arbitrary>], iteration_bounds = array<i64: 1, 1>, scalar_prefetch = 0 : i64, scratch_operands = 2 : i64, tpu.core_type = #tpu.core_type<tc>, window_params = [{transform_indices = @transform_0, window_bounds = array<i64: 16, 128>}, {transform_indices = @transform_1, window_bounds = array<i64: 8, 16, 128>}, {pipeline_mode = #tpu.pipeline_mode<synchronous>, transform_indices = @transform_2, window_bounds = array<i64: 128, 384>}, {pipeline_mode = #tpu.pipeline_mode<synchronous>, transform_indices = @transform_3, window_bounds = array<i64: 128, 384>}, {pipeline_mode = #tpu.pipeline_mode<synchronous>, transform_indices = @transform_4, window_bounds = array<i64: 1, 384>}, {pipeline_mode = #tpu.pipeline_mode<synchronous>, transform_indices = @transform_5, window_bounds = array<i64: 1, 128>}, {transform_indices = @transform_6, window_bounds = array<i64: 8, 16, 128>}]} {
    %c0_i32 = arith.constant 0 : i32
    %0 = arith.cmpi eq, %arg1, %c0_i32 : i32
    %1 = arith.extui %0 : i1 to i32
    %c0_i32_0 = arith.constant 0 : i32
    %2 = arith.cmpi ne, %1, %c0_i32_0 : i32
    scf.if %2 {
      %c0_75 = arith.constant 0 : index
      %c0_76 = arith.constant 0 : index
      %272 = vector.load %arg2[%c0_75, %c0_76] : memref<16x128xf32, #tpu.memory_space<vmem>>, vector<16x128xf32>
      %c0_77 = arith.constant 0 : index
      %c0_78 = arith.constant 0 : index
      %273 = vector.load %arg10[%c0_77, %c0_78] : memref<16x128xf32, #tpu.memory_space<vmem>>, vector<16x128xf32>
      tpu.vector_store %arg10[%c0_77, %c0_78], %272 {strides = array<i32>} : memref<16x128xf32, #tpu.memory_space<vmem>>, vector<16x128xf32>,
    } else {
    }
    %c0 = arith.constant 0 : index
    %c0_1 = arith.constant 0 : index
    %c0_2 = arith.constant 0 : index
    %3 = vector.load %arg3[%c0, %c0_1, %c0_2] : memref<8x16x128xbf16, #tpu.memory_space<vmem>>, vector<8x16x128xbf16>
    %4 = vector.shape_cast %3 : vector<8x16x128xbf16> to vector<128x128xbf16>
    %c0_3 = arith.constant 0 : index
    %c0_4 = arith.constant 0 : index
    %5 = vector.load %arg4[%c0_3, %c0_4] : memref<128x384xbf16, #tpu.memory_space<vmem>>, vector<128x384xbf16>
    %cst = arith.constant dense<0.000000e+00> : vector<128x384xf32>
    %6 = tpu.matmul %4, %5, %cst {dimension_numbers = #tpu.dot_dimension_numbers<[1], [0], [0], [1], [0, 0, 1, 1], [], []>} : vector<128x128xbf16>, vector<128x384xbf16>, vector<128x384xf32> -> vector<128x384xf32>
    %c0_5 = arith.constant 0 : index
    %c0_6 = arith.constant 0 : index
    %7 = vector.load %arg6[%c0_5, %c0_6] : memref<1x384xf32, #tpu.memory_space<vmem>>, vector<1x384xf32>
    %8 = vector.broadcast %7 : vector<1x384xf32> to vector<128x384xf32>
    %9 = arith.addf %6, %8 : vector<128x384xf32>
    %10 = vector.shape_cast %9 : vector<128x384xf32> to vector<8x16x384xf32>
    %c0_7 = arith.constant 0 : index
    %c0_8 = arith.constant 0 : index
    %c0_9 = arith.constant 0 : index
    %11 = vector.load %arg9[%c0_7, %c0_8, %c0_9] : memref<8x16x384xf32, #tpu.memory_space<vmem>>, vector<8x16x384xf32>
    tpu.vector_store %arg9[%c0_7, %c0_8, %c0_9], %10 {strides = array<i32>} : memref<8x16x384xf32, #tpu.memory_space<vmem>>, vector<8x16x384xf32>,
    %c0_10 = arith.constant 0 : index
    %c0_11 = arith.constant 0 : index
    %12 = vector.load %arg5[%c0_10, %c0_11] : memref<128x384xbf16, #tpu.memory_space<vmem>>, vector<128x384xbf16>
    %c0_12 = arith.constant 0 : index
    %c0_13 = arith.constant 0 : index
    %13 = vector.load %arg7[%c0_12, %c0_13] : memref<1x128xf32, #tpu.memory_space<vmem>>, vector<1x128xf32>
    %c0_14 = arith.constant 0 : index
    %c0_15 = arith.constant 0 : index
    %14 = vector.load %arg10[%c0_14, %c0_15] : memref<16x128xf32, #tpu.memory_space<vmem>>, vector<16x128xf32>
    %c0_i32_16 = arith.constant 0 : i32
    %15 = arith.truncf %14 : vector<16x128xf32> to vector<16x128xbf16>
    %cst_17 = arith.constant dense<0.000000e+00> : vector<16x384xf32>
    %16 = tpu.matmul %15, %12, %cst_17 {dimension_numbers = #tpu.dot_dimension_numbers<[1], [0], [0], [1], [0, 0, 1, 1], [], []>} : vector<16x128xbf16>, vector<128x384xbf16>, vector<16x384xf32> -> vector<16x384xf32>
    %17 = arith.index_cast %c0_i32_16 : i32 to index
    %c0_18 = arith.constant 0 : index
    %c0_19 = arith.constant 0 : index
    %18 = vector.load %arg9[%17, %c0_18, %c0_19] : memref<8x16x384xf32, #tpu.memory_space<vmem>>, vector<1x16x384xf32>
    %19 = vector.shape_cast %18 : vector<1x16x384xf32> to vector<16x384xf32>
    %20 = vector.extract_strided_slice %19 {offsets = [0, 0], sizes = [16, 256], strides = [1, 1]} : vector<16x384xf32> to vector<16x256xf32>
    %21 = vector.extract_strided_slice %16 {offsets = [0, 0], sizes = [16, 256], strides = [1, 1]} : vector<16x384xf32> to vector<16x256xf32>
    %22 = arith.addf %20, %21 : vector<16x256xf32>
    %23 = arith.negf %22 : vector<16x256xf32>
    %24 = math.exp %23 : vector<16x256xf32>
    %cst_20 = arith.constant 1.000000e+00 : f32
    %25 = vector.broadcast %cst_20 : f32 to vector<16x256xf32>
    %26 = arith.addf %25, %24 : vector<16x256xf32>
    %27 = arith.divf %25, %26 : vector<16x256xf32>
    %28 = vector.extract_strided_slice %27 {offsets = [0, 0], sizes = [16, 128], strides = [1, 1]} : vector<16x256xf32> to vector<16x128xf32>
    %29 = vector.extract_strided_slice %27 {offsets = [0, 128], sizes = [16, 128], strides = [1, 1]} : vector<16x256xf32> to vector<16x128xf32>
    %30 = vector.extract_strided_slice %19 {offsets = [0, 256], sizes = [16, 128], strides = [1, 1]} : vector<16x384xf32> to vector<16x128xf32>
    %31 = vector.extract_strided_slice %16 {offsets = [0, 256], sizes = [16, 128], strides = [1, 1]} : vector<16x384xf32> to vector<16x128xf32>
    %32 = vector.broadcast %13 : vector<1x128xf32> to vector<16x128xf32>
    %33 = arith.addf %31, %32 : vector<16x128xf32>
    %34 = arith.mulf %28, %33 : vector<16x128xf32>
    %35 = arith.addf %30, %34 : vector<16x128xf32>
    %36 = math.tanh %35 : vector<16x128xf32>
    %cst_21 = arith.constant 1.000000e+00 : f32
    %37 = vector.broadcast %cst_21 : f32 to vector<16x128xf32>
    %38 = arith.subf %37, %29 : vector<16x128xf32>
    %39 = arith.mulf %38, %36 : vector<16x128xf32>
    %40 = arith.mulf %29, %14 : vector<16x128xf32>
    %41 = arith.addf %39, %40 : vector<16x128xf32>
    %42 = arith.truncf %41 : vector<16x128xf32> to vector<16x128xbf16>
    %43 = arith.index_cast %c0_i32_16 : i32 to index
    %c0_22 = arith.constant 0 : index
    %c0_23 = arith.constant 0 : index
    %44 = vector.load %arg8[%43, %c0_22, %c0_23] : memref<8x16x128xbf16, #tpu.memory_space<vmem>>, vector<1x16x128xbf16>
    %45 = vector.shape_cast %44 : vector<1x16x128xbf16> to vector<16x128xbf16>
    %46 = vector.shape_cast %42 : vector<16x128xbf16> to vector<1x16x128xbf16>
    tpu.vector_store %arg8[%43, %c0_22, %c0_23], %46 {strides = array<i32>} : memref<8x16x128xbf16, #tpu.memory_space<vmem>>, vector<1x16x128xbf16>,
    %c1_i32 = arith.constant 1 : i32
    %47 = arith.truncf %41 : vector<16x128xf32> to vector<16x128xbf16>
    %cst_24 = arith.constant dense<0.000000e+00> : vector<16x384xf32>
    %48 = tpu.matmul %47, %12, %cst_24 {dimension_numbers = #tpu.dot_dimension_numbers<[1], [0], [0], [1], [0, 0, 1, 1], [], []>} : vector<16x128xbf16>, vector<128x384xbf16>, vector<16x384xf32> -> vector<16x384xf32>
    %49 = arith.index_cast %c1_i32 : i32 to index
    %c0_25 = arith.constant 0 : index
    %c0_26 = arith.constant 0 : index
    %50 = vector.load %arg9[%49, %c0_25, %c0_26] : memref<8x16x384xf32, #tpu.memory_space<vmem>>, vector<1x16x384xf32>
    %51 = vector.shape_cast %50 : vector<1x16x384xf32> to vector<16x384xf32>
    %52 = vector.extract_strided_slice %51 {offsets = [0, 0], sizes = [16, 256], strides = [1, 1]} : vector<16x384xf32> to vector<16x256xf32>
    %53 = vector.extract_strided_slice %48 {offsets = [0, 0], sizes = [16, 256], strides = [1, 1]} : vector<16x384xf32> to vector<16x256xf32>
    %54 = arith.addf %52, %53 : vector<16x256xf32>
    %55 = arith.negf %54 : vector<16x256xf32>
    %56 = math.exp %55 : vector<16x256xf32>
    %cst_27 = arith.constant 1.000000e+00 : f32
    %57 = vector.broadcast %cst_27 : f32 to vector<16x256xf32>
    %58 = arith.addf %57, %56 : vector<16x256xf32>
    %59 = arith.divf %57, %58 : vector<16x256xf32>
    %60 = vector.extract_strided_slice %59 {offsets = [0, 0], sizes = [16, 128], strides = [1, 1]} : vector<16x256xf32> to vector<16x128xf32>
    %61 = vector.extract_strided_slice %59 {offsets = [0, 128], sizes = [16, 128], strides = [1, 1]} : vector<16x256xf32> to vector<16x128xf32>
    %62 = vector.extract_strided_slice %51 {offsets = [0, 256], sizes = [16, 128], strides = [1, 1]} : vector<16x384xf32> to vector<16x128xf32>
    %63 = vector.extract_strided_slice %48 {offsets = [0, 256], sizes = [16, 128], strides = [1, 1]} : vector<16x384xf32> to vector<16x128xf32>
    %64 = vector.broadcast %13 : vector<1x128xf32> to vector<16x128xf32>
    %65 = arith.addf %63, %64 : vector<16x128xf32>
    %66 = arith.mulf %60, %65 : vector<16x128xf32>
    %67 = arith.addf %62, %66 : vector<16x128xf32>
    %68 = math.tanh %67 : vector<16x128xf32>
    %cst_28 = arith.constant 1.000000e+00 : f32
    %69 = vector.broadcast %cst_28 : f32 to vector<16x128xf32>
    %70 = arith.subf %69, %61 : vector<16x128xf32>
    %71 = arith.mulf %70, %68 : vector<16x128xf32>
    %72 = arith.mulf %61, %41 : vector<16x128xf32>
    %73 = arith.addf %71, %72 : vector<16x128xf32>
    %74 = arith.truncf %73 : vector<16x128xf32> to vector<16x128xbf16>
    %75 = arith.index_cast %c1_i32 : i32 to index
    %c0_29 = arith.constant 0 : index
    %c0_30 = arith.constant 0 : index
    %76 = vector.load %arg8[%75, %c0_29, %c0_30] : memref<8x16x128xbf16, #tpu.memory_space<vmem>>, vector<1x16x128xbf16>
    %77 = vector.shape_cast %76 : vector<1x16x128xbf16> to vector<16x128xbf16>
    %78 = vector.shape_cast %74 : vector<16x128xbf16> to vector<1x16x128xbf16>
    tpu.vector_store %arg8[%75, %c0_29, %c0_30], %78 {strides = array<i32>} : memref<8x16x128xbf16, #tpu.memory_space<vmem>>, vector<1x16x128xbf16>,
    %c2_i32 = arith.constant 2 : i32
    %79 = arith.truncf %73 : vector<16x128xf32> to vector<16x128xbf16>
    %cst_31 = arith.constant dense<0.000000e+00> : vector<16x384xf32>
    %80 = tpu.matmul %79, %12, %cst_31 {dimension_numbers = #tpu.dot_dimension_numbers<[1], [0], [0], [1], [0, 0, 1, 1], [], []>} : vector<16x128xbf16>, vector<128x384xbf16>, vector<16x384xf32> -> vector<16x384xf32>
    %81 = arith.index_cast %c2_i32 : i32 to index
    %c0_32 = arith.constant 0 : index
    %c0_33 = arith.constant 0 : index
    %82 = vector.load %arg9[%81, %c0_32, %c0_33] : memref<8x16x384xf32, #tpu.memory_space<vmem>>, vector<1x16x384xf32>
    %83 = vector.shape_cast %82 : vector<1x16x384xf32> to vector<16x384xf32>
    %84 = vector.extract_strided_slice %83 {offsets = [0, 0], sizes = [16, 256], strides = [1, 1]} : vector<16x384xf32> to vector<16x256xf32>
    %85 = vector.extract_strided_slice %80 {offsets = [0, 0], sizes = [16, 256], strides = [1, 1]} : vector<16x384xf32> to vector<16x256xf32>
    %86 = arith.addf %84, %85 : vector<16x256xf32>
    %87 = arith.negf %86 : vector<16x256xf32>
    %88 = math.exp %87 : vector<16x256xf32>
    %cst_34 = arith.constant 1.000000e+00 : f32
    %89 = vector.broadcast %cst_34 : f32 to vector<16x256xf32>
    %90 = arith.addf %89, %88 : vector<16x256xf32>
    %91 = arith.divf %89, %90 : vector<16x256xf32>
    %92 = vector.extract_strided_slice %91 {offsets = [0, 0], sizes = [16, 128], strides = [1, 1]} : vector<16x256xf32> to vector<16x128xf32>
    %93 = vector.extract_strided_slice %91 {offsets = [0, 128], sizes = [16, 128], strides = [1, 1]} : vector<16x256xf32> to vector<16x128xf32>
    %94 = vector.extract_strided_slice %83 {offsets = [0, 256], sizes = [16, 128], strides = [1, 1]} : vector<16x384xf32> to vector<16x128xf32>
    %95 = vector.extract_strided_slice %80 {offsets = [0, 256], sizes = [16, 128], strides = [1, 1]} : vector<16x384xf32> to vector<16x128xf32>
    %96 = vector.broadcast %13 : vector<1x128xf32> to vector<16x128xf32>
    %97 = arith.addf %95, %96 : vector<16x128xf32>
    %98 = arith.mulf %92, %97 : vector<16x128xf32>
    %99 = arith.addf %94, %98 : vector<16x128xf32>
    %100 = math.tanh %99 : vector<16x128xf32>
    %cst_35 = arith.constant 1.000000e+00 : f32
    %101 = vector.broadcast %cst_35 : f32 to vector<16x128xf32>
    %102 = arith.subf %101, %93 : vector<16x128xf32>
    %103 = arith.mulf %102, %100 : vector<16x128xf32>
    %104 = arith.mulf %93, %73 : vector<16x128xf32>
    %105 = arith.addf %103, %104 : vector<16x128xf32>
    %106 = arith.truncf %105 : vector<16x128xf32> to vector<16x128xbf16>
    %107 = arith.index_cast %c2_i32 : i32 to index
    %c0_36 = arith.constant 0 : index
    %c0_37 = arith.constant 0 : index
    %108 = vector.load %arg8[%107, %c0_36, %c0_37] : memref<8x16x128xbf16, #tpu.memory_space<vmem>>, vector<1x16x128xbf16>
    %109 = vector.shape_cast %108 : vector<1x16x128xbf16> to vector<16x128xbf16>
    %110 = vector.shape_cast %106 : vector<16x128xbf16> to vector<1x16x128xbf16>
    tpu.vector_store %arg8[%107, %c0_36, %c0_37], %110 {strides = array<i32>} : memref<8x16x128xbf16, #tpu.memory_space<vmem>>, vector<1x16x128xbf16>,
    %c3_i32 = arith.constant 3 : i32
    %111 = arith.truncf %105 : vector<16x128xf32> to vector<16x128xbf16>
    %cst_38 = arith.constant dense<0.000000e+00> : vector<16x384xf32>
    %112 = tpu.matmul %111, %12, %cst_38 {dimension_numbers = #tpu.dot_dimension_numbers<[1], [0], [0], [1], [0, 0, 1, 1], [], []>} : vector<16x128xbf16>, vector<128x384xbf16>, vector<16x384xf32> -> vector<16x384xf32>
    %113 = arith.index_cast %c3_i32 : i32 to index
    %c0_39 = arith.constant 0 : index
    %c0_40 = arith.constant 0 : index
    %114 = vector.load %arg9[%113, %c0_39, %c0_40] : memref<8x16x384xf32, #tpu.memory_space<vmem>>, vector<1x16x384xf32>
    %115 = vector.shape_cast %114 : vector<1x16x384xf32> to vector<16x384xf32>
    %116 = vector.extract_strided_slice %115 {offsets = [0, 0], sizes = [16, 256], strides = [1, 1]} : vector<16x384xf32> to vector<16x256xf32>
    %117 = vector.extract_strided_slice %112 {offsets = [0, 0], sizes = [16, 256], strides = [1, 1]} : vector<16x384xf32> to vector<16x256xf32>
    %118 = arith.addf %116, %117 : vector<16x256xf32>
    %119 = arith.negf %118 : vector<16x256xf32>
    %120 = math.exp %119 : vector<16x256xf32>
    %cst_41 = arith.constant 1.000000e+00 : f32
    %121 = vector.broadcast %cst_41 : f32 to vector<16x256xf32>
    %122 = arith.addf %121, %120 : vector<16x256xf32>
    %123 = arith.divf %121, %122 : vector<16x256xf32>
    %124 = vector.extract_strided_slice %123 {offsets = [0, 0], sizes = [16, 128], strides = [1, 1]} : vector<16x256xf32> to vector<16x128xf32>
    %125 = vector.extract_strided_slice %123 {offsets = [0, 128], sizes = [16, 128], strides = [1, 1]} : vector<16x256xf32> to vector<16x128xf32>
    %126 = vector.extract_strided_slice %115 {offsets = [0, 256], sizes = [16, 128], strides = [1, 1]} : vector<16x384xf32> to vector<16x128xf32>
    %127 = vector.extract_strided_slice %112 {offsets = [0, 256], sizes = [16, 128], strides = [1, 1]} : vector<16x384xf32> to vector<16x128xf32>
    %128 = vector.broadcast %13 : vector<1x128xf32> to vector<16x128xf32>
    %129 = arith.addf %127, %128 : vector<16x128xf32>
    %130 = arith.mulf %124, %129 : vector<16x128xf32>
    %131 = arith.addf %126, %130 : vector<16x128xf32>
    %132 = math.tanh %131 : vector<16x128xf32>
    %cst_42 = arith.constant 1.000000e+00 : f32
    %133 = vector.broadcast %cst_42 : f32 to vector<16x128xf32>
    %134 = arith.subf %133, %125 : vector<16x128xf32>
    %135 = arith.mulf %134, %132 : vector<16x128xf32>
    %136 = arith.mulf %125, %105 : vector<16x128xf32>
    %137 = arith.addf %135, %136 : vector<16x128xf32>
    %138 = arith.truncf %137 : vector<16x128xf32> to vector<16x128xbf16>
    %139 = arith.index_cast %c3_i32 : i32 to index
    %c0_43 = arith.constant 0 : index
    %c0_44 = arith.constant 0 : index
    %140 = vector.load %arg8[%139, %c0_43, %c0_44] : memref<8x16x128xbf16, #tpu.memory_space<vmem>>, vector<1x16x128xbf16>
    %141 = vector.shape_cast %140 : vector<1x16x128xbf16> to vector<16x128xbf16>
    %142 = vector.shape_cast %138 : vector<16x128xbf16> to vector<1x16x128xbf16>
    tpu.vector_store %arg8[%139, %c0_43, %c0_44], %142 {strides = array<i32>} : memref<8x16x128xbf16, #tpu.memory_space<vmem>>, vector<1x16x128xbf16>,
    %c4_i32 = arith.constant 4 : i32
    %143 = arith.truncf %137 : vector<16x128xf32> to vector<16x128xbf16>
    %cst_45 = arith.constant dense<0.000000e+00> : vector<16x384xf32>
    %144 = tpu.matmul %143, %12, %cst_45 {dimension_numbers = #tpu.dot_dimension_numbers<[1], [0], [0], [1], [0, 0, 1, 1], [], []>} : vector<16x128xbf16>, vector<128x384xbf16>, vector<16x384xf32> -> vector<16x384xf32>
    %145 = arith.index_cast %c4_i32 : i32 to index
    %c0_46 = arith.constant 0 : index
    %c0_47 = arith.constant 0 : index
    %146 = vector.load %arg9[%145, %c0_46, %c0_47] : memref<8x16x384xf32, #tpu.memory_space<vmem>>, vector<1x16x384xf32>
    %147 = vector.shape_cast %146 : vector<1x16x384xf32> to vector<16x384xf32>
    %148 = vector.extract_strided_slice %147 {offsets = [0, 0], sizes = [16, 256], strides = [1, 1]} : vector<16x384xf32> to vector<16x256xf32>
    %149 = vector.extract_strided_slice %144 {offsets = [0, 0], sizes = [16, 256], strides = [1, 1]} : vector<16x384xf32> to vector<16x256xf32>
    %150 = arith.addf %148, %149 : vector<16x256xf32>
    %151 = arith.negf %150 : vector<16x256xf32>
    %152 = math.exp %151 : vector<16x256xf32>
    %cst_48 = arith.constant 1.000000e+00 : f32
    %153 = vector.broadcast %cst_48 : f32 to vector<16x256xf32>
    %154 = arith.addf %153, %152 : vector<16x256xf32>
    %155 = arith.divf %153, %154 : vector<16x256xf32>
    %156 = vector.extract_strided_slice %155 {offsets = [0, 0], sizes = [16, 128], strides = [1, 1]} : vector<16x256xf32> to vector<16x128xf32>
    %157 = vector.extract_strided_slice %155 {offsets = [0, 128], sizes = [16, 128], strides = [1, 1]} : vector<16x256xf32> to vector<16x128xf32>
    %158 = vector.extract_strided_slice %147 {offsets = [0, 256], sizes = [16, 128], strides = [1, 1]} : vector<16x384xf32> to vector<16x128xf32>
    %159 = vector.extract_strided_slice %144 {offsets = [0, 256], sizes = [16, 128], strides = [1, 1]} : vector<16x384xf32> to vector<16x128xf32>
    %160 = vector.broadcast %13 : vector<1x128xf32> to vector<16x128xf32>
    %161 = arith.addf %159, %160 : vector<16x128xf32>
    %162 = arith.mulf %156, %161 : vector<16x128xf32>
    %163 = arith.addf %158, %162 : vector<16x128xf32>
    %164 = math.tanh %163 : vector<16x128xf32>
    %cst_49 = arith.constant 1.000000e+00 : f32
    %165 = vector.broadcast %cst_49 : f32 to vector<16x128xf32>
    %166 = arith.subf %165, %157 : vector<16x128xf32>
    %167 = arith.mulf %166, %164 : vector<16x128xf32>
    %168 = arith.mulf %157, %137 : vector<16x128xf32>
    %169 = arith.addf %167, %168 : vector<16x128xf32>
    %170 = arith.truncf %169 : vector<16x128xf32> to vector<16x128xbf16>
    %171 = arith.index_cast %c4_i32 : i32 to index
    %c0_50 = arith.constant 0 : index
    %c0_51 = arith.constant 0 : index
    %172 = vector.load %arg8[%171, %c0_50, %c0_51] : memref<8x16x128xbf16, #tpu.memory_space<vmem>>, vector<1x16x128xbf16>
    %173 = vector.shape_cast %172 : vector<1x16x128xbf16> to vector<16x128xbf16>
    %174 = vector.shape_cast %170 : vector<16x128xbf16> to vector<1x16x128xbf16>
    tpu.vector_store %arg8[%171, %c0_50, %c0_51], %174 {strides = array<i32>} : memref<8x16x128xbf16, #tpu.memory_space<vmem>>, vector<1x16x128xbf16>,
    %c5_i32 = arith.constant 5 : i32
    %175 = arith.truncf %169 : vector<16x128xf32> to vector<16x128xbf16>
    %cst_52 = arith.constant dense<0.000000e+00> : vector<16x384xf32>
    %176 = tpu.matmul %175, %12, %cst_52 {dimension_numbers = #tpu.dot_dimension_numbers<[1], [0], [0], [1], [0, 0, 1, 1], [], []>} : vector<16x128xbf16>, vector<128x384xbf16>, vector<16x384xf32> -> vector<16x384xf32>
    %177 = arith.index_cast %c5_i32 : i32 to index
    %c0_53 = arith.constant 0 : index
    %c0_54 = arith.constant 0 : index
    %178 = vector.load %arg9[%177, %c0_53, %c0_54] : memref<8x16x384xf32, #tpu.memory_space<vmem>>, vector<1x16x384xf32>
    %179 = vector.shape_cast %178 : vector<1x16x384xf32> to vector<16x384xf32>
    %180 = vector.extract_strided_slice %179 {offsets = [0, 0], sizes = [16, 256], strides = [1, 1]} : vector<16x384xf32> to vector<16x256xf32>
    %181 = vector.extract_strided_slice %176 {offsets = [0, 0], sizes = [16, 256], strides = [1, 1]} : vector<16x384xf32> to vector<16x256xf32>
    %182 = arith.addf %180, %181 : vector<16x256xf32>
    %183 = arith.negf %182 : vector<16x256xf32>
    %184 = math.exp %183 : vector<16x256xf32>
    %cst_55 = arith.constant 1.000000e+00 : f32
    %185 = vector.broadcast %cst_55 : f32 to vector<16x256xf32>
    %186 = arith.addf %185, %184 : vector<16x256xf32>
    %187 = arith.divf %185, %186 : vector<16x256xf32>
    %188 = vector.extract_strided_slice %187 {offsets = [0, 0], sizes = [16, 128], strides = [1, 1]} : vector<16x256xf32> to vector<16x128xf32>
    %189 = vector.extract_strided_slice %187 {offsets = [0, 128], sizes = [16, 128], strides = [1, 1]} : vector<16x256xf32> to vector<16x128xf32>
    %190 = vector.extract_strided_slice %179 {offsets = [0, 256], sizes = [16, 128], strides = [1, 1]} : vector<16x384xf32> to vector<16x128xf32>
    %191 = vector.extract_strided_slice %176 {offsets = [0, 256], sizes = [16, 128], strides = [1, 1]} : vector<16x384xf32> to vector<16x128xf32>
    %192 = vector.broadcast %13 : vector<1x128xf32> to vector<16x128xf32>
    %193 = arith.addf %191, %192 : vector<16x128xf32>
    %194 = arith.mulf %188, %193 : vector<16x128xf32>
    %195 = arith.addf %190, %194 : vector<16x128xf32>
    %196 = math.tanh %195 : vector<16x128xf32>
    %cst_56 = arith.constant 1.000000e+00 : f32
    %197 = vector.broadcast %cst_56 : f32 to vector<16x128xf32>
    %198 = arith.subf %197, %189 : vector<16x128xf32>
    %199 = arith.mulf %198, %196 : vector<16x128xf32>
    %200 = arith.mulf %189, %169 : vector<16x128xf32>
    %201 = arith.addf %199, %200 : vector<16x128xf32>
    %202 = arith.truncf %201 : vector<16x128xf32> to vector<16x128xbf16>
    %203 = arith.index_cast %c5_i32 : i32 to index
    %c0_57 = arith.constant 0 : index
    %c0_58 = arith.constant 0 : index
    %204 = vector.load %arg8[%203, %c0_57, %c0_58] : memref<8x16x128xbf16, #tpu.memory_space<vmem>>, vector<1x16x128xbf16>
    %205 = vector.shape_cast %204 : vector<1x16x128xbf16> to vector<16x128xbf16>
    %206 = vector.shape_cast %202 : vector<16x128xbf16> to vector<1x16x128xbf16>
    tpu.vector_store %arg8[%203, %c0_57, %c0_58], %206 {strides = array<i32>} : memref<8x16x128xbf16, #tpu.memory_space<vmem>>, vector<1x16x128xbf16>,
    %c6_i32 = arith.constant 6 : i32
    %207 = arith.truncf %201 : vector<16x128xf32> to vector<16x128xbf16>
    %cst_59 = arith.constant dense<0.000000e+00> : vector<16x384xf32>
    %208 = tpu.matmul %207, %12, %cst_59 {dimension_numbers = #tpu.dot_dimension_numbers<[1], [0], [0], [1], [0, 0, 1, 1], [], []>} : vector<16x128xbf16>, vector<128x384xbf16>, vector<16x384xf32> -> vector<16x384xf32>
    %209 = arith.index_cast %c6_i32 : i32 to index
    %c0_60 = arith.constant 0 : index
    %c0_61 = arith.constant 0 : index
    %210 = vector.load %arg9[%209, %c0_60, %c0_61] : memref<8x16x384xf32, #tpu.memory_space<vmem>>, vector<1x16x384xf32>
    %211 = vector.shape_cast %210 : vector<1x16x384xf32> to vector<16x384xf32>
    %212 = vector.extract_strided_slice %211 {offsets = [0, 0], sizes = [16, 256], strides = [1, 1]} : vector<16x384xf32> to vector<16x256xf32>
    %213 = vector.extract_strided_slice %208 {offsets = [0, 0], sizes = [16, 256], strides = [1, 1]} : vector<16x384xf32> to vector<16x256xf32>
    %214 = arith.addf %212, %213 : vector<16x256xf32>
    %215 = arith.negf %214 : vector<16x256xf32>
    %216 = math.exp %215 : vector<16x256xf32>
    %cst_62 = arith.constant 1.000000e+00 : f32
    %217 = vector.broadcast %cst_62 : f32 to vector<16x256xf32>
    %218 = arith.addf %217, %216 : vector<16x256xf32>
    %219 = arith.divf %217, %218 : vector<16x256xf32>
    %220 = vector.extract_strided_slice %219 {offsets = [0, 0], sizes = [16, 128], strides = [1, 1]} : vector<16x256xf32> to vector<16x128xf32>
    %221 = vector.extract_strided_slice %219 {offsets = [0, 128], sizes = [16, 128], strides = [1, 1]} : vector<16x256xf32> to vector<16x128xf32>
    %222 = vector.extract_strided_slice %211 {offsets = [0, 256], sizes = [16, 128], strides = [1, 1]} : vector<16x384xf32> to vector<16x128xf32>
    %223 = vector.extract_strided_slice %208 {offsets = [0, 256], sizes = [16, 128], strides = [1, 1]} : vector<16x384xf32> to vector<16x128xf32>
    %224 = vector.broadcast %13 : vector<1x128xf32> to vector<16x128xf32>
    %225 = arith.addf %223, %224 : vector<16x128xf32>
    %226 = arith.mulf %220, %225 : vector<16x128xf32>
    %227 = arith.addf %222, %226 : vector<16x128xf32>
    %228 = math.tanh %227 : vector<16x128xf32>
    %cst_63 = arith.constant 1.000000e+00 : f32
    %229 = vector.broadcast %cst_63 : f32 to vector<16x128xf32>
    %230 = arith.subf %229, %221 : vector<16x128xf32>
    %231 = arith.mulf %230, %228 : vector<16x128xf32>
    %232 = arith.mulf %221, %201 : vector<16x128xf32>
    %233 = arith.addf %231, %232 : vector<16x128xf32>
    %234 = arith.truncf %233 : vector<16x128xf32> to vector<16x128xbf16>
    %235 = arith.index_cast %c6_i32 : i32 to index
    %c0_64 = arith.constant 0 : index
    %c0_65 = arith.constant 0 : index
    %236 = vector.load %arg8[%235, %c0_64, %c0_65] : memref<8x16x128xbf16, #tpu.memory_space<vmem>>, vector<1x16x128xbf16>
    %237 = vector.shape_cast %236 : vector<1x16x128xbf16> to vector<16x128xbf16>
    %238 = vector.shape_cast %234 : vector<16x128xbf16> to vector<1x16x128xbf16>
    tpu.vector_store %arg8[%235, %c0_64, %c0_65], %238 {strides = array<i32>} : memref<8x16x128xbf16, #tpu.memory_space<vmem>>, vector<1x16x128xbf16>,
    %c7_i32 = arith.constant 7 : i32
    %239 = arith.truncf %233 : vector<16x128xf32> to vector<16x128xbf16>
    %cst_66 = arith.constant dense<0.000000e+00> : vector<16x384xf32>
    %240 = tpu.matmul %239, %12, %cst_66 {dimension_numbers = #tpu.dot_dimension_numbers<[1], [0], [0], [1], [0, 0, 1, 1], [], []>} : vector<16x128xbf16>, vector<128x384xbf16>, vector<16x384xf32> -> vector<16x384xf32>
    %241 = arith.index_cast %c7_i32 : i32 to index
    %c0_67 = arith.constant 0 : index
    %c0_68 = arith.constant 0 : index
    %242 = vector.load %arg9[%241, %c0_67, %c0_68] : memref<8x16x384xf32, #tpu.memory_space<vmem>>, vector<1x16x384xf32>
    %243 = vector.shape_cast %242 : vector<1x16x384xf32> to vector<16x384xf32>
    %244 = vector.extract_strided_slice %243 {offsets = [0, 0], sizes = [16, 256], strides = [1, 1]} : vector<16x384xf32> to vector<16x256xf32>
    %245 = vector.extract_strided_slice %240 {offsets = [0, 0], sizes = [16, 256], strides = [1, 1]} : vector<16x384xf32> to vector<16x256xf32>
    %246 = arith.addf %244, %245 : vector<16x256xf32>
    %247 = arith.negf %246 : vector<16x256xf32>
    %248 = math.exp %247 : vector<16x256xf32>
    %cst_69 = arith.constant 1.000000e+00 : f32
    %249 = vector.broadcast %cst_69 : f32 to vector<16x256xf32>
    %250 = arith.addf %249, %248 : vector<16x256xf32>
    %251 = arith.divf %249, %250 : vector<16x256xf32>
    %252 = vector.extract_strided_slice %251 {offsets = [0, 0], sizes = [16, 128], strides = [1, 1]} : vector<16x256xf32> to vector<16x128xf32>
    %253 = vector.extract_strided_slice %251 {offsets = [0, 128], sizes = [16, 128], strides = [1, 1]} : vector<16x256xf32> to vector<16x128xf32>
    %254 = vector.extract_strided_slice %243 {offsets = [0, 256], sizes = [16, 128], strides = [1, 1]} : vector<16x384xf32> to vector<16x128xf32>
    %255 = vector.extract_strided_slice %240 {offsets = [0, 256], sizes = [16, 128], strides = [1, 1]} : vector<16x384xf32> to vector<16x128xf32>
    %256 = vector.broadcast %13 : vector<1x128xf32> to vector<16x128xf32>
    %257 = arith.addf %255, %256 : vector<16x128xf32>
    %258 = arith.mulf %252, %257 : vector<16x128xf32>
    %259 = arith.addf %254, %258 : vector<16x128xf32>
    %260 = math.tanh %259 : vector<16x128xf32>
    %cst_70 = arith.constant 1.000000e+00 : f32
    %261 = vector.broadcast %cst_70 : f32 to vector<16x128xf32>
    %262 = arith.subf %261, %253 : vector<16x128xf32>
    %263 = arith.mulf %262, %260 : vector<16x128xf32>
    %264 = arith.mulf %253, %233 : vector<16x128xf32>
    %265 = arith.addf %263, %264 : vector<16x128xf32>
    %266 = arith.truncf %265 : vector<16x128xf32> to vector<16x128xbf16>
    %267 = arith.index_cast %c7_i32 : i32 to index
    %c0_71 = arith.constant 0 : index
    %c0_72 = arith.constant 0 : index
    %268 = vector.load %arg8[%267, %c0_71, %c0_72] : memref<8x16x128xbf16, #tpu.memory_space<vmem>>, vector<1x16x128xbf16>
    %269 = vector.shape_cast %268 : vector<1x16x128xbf16> to vector<16x128xbf16>
    %270 = vector.shape_cast %266 : vector<16x128xbf16> to vector<1x16x128xbf16>
    tpu.vector_store %arg8[%267, %c0_71, %c0_72], %270 {strides = array<i32>} : memref<8x16x128xbf16, #tpu.memory_space<vmem>>, vector<1x16x128xbf16>,
    %c8_i32 = arith.constant 8 : i32
    %c0_73 = arith.constant 0 : index
    %c0_74 = arith.constant 0 : index
    %271 = vector.load %arg10[%c0_73, %c0_74] : memref<16x128xf32, #tpu.memory_space<vmem>>, vector<16x128xf32>
    tpu.vector_store %arg10[%c0_73, %c0_74], %265 {strides = array<i32>} : memref<16x128xf32, #tpu.memory_space<vmem>>, vector<16x128xf32>,
    return
  }
  func.func @transform_0(%arg0: i32, %arg1: i32) -> (i32, i32) {
    %c0_i32 = arith.constant 0 : i32
    %c0_i32_0 = arith.constant 0 : i32
    return %arg0, %c0_i32 : i32, i32
  }
  func.func @transform_1(%arg0: i32, %arg1: i32) -> (i32, i32, i32) {
    %c0_i32 = arith.constant 0 : i32
    %c0_i32_0 = arith.constant 0 : i32
    return %arg1, %arg0, %c0_i32 : i32, i32, i32
  }
  func.func @transform_2(%arg0: i32, %arg1: i32) -> (i32, i32) {
    %c0_i32 = arith.constant 0 : i32
    %c0_i32_0 = arith.constant 0 : i32
    %c0_i32_1 = arith.constant 0 : i32
    return %c0_i32, %c0_i32_0 : i32, i32
  }
  func.func @transform_3(%arg0: i32, %arg1: i32) -> (i32, i32) {
    %c0_i32 = arith.constant 0 : i32
    %c0_i32_0 = arith.constant 0 : i32
    %c0_i32_1 = arith.constant 0 : i32
    return %c0_i32, %c0_i32_0 : i32, i32
  }
  func.func @transform_4(%arg0: i32, %arg1: i32) -> (i32, i32) {
    %c0_i32 = arith.constant 0 : i32
    %c0_i32_0 = arith.constant 0 : i32
    %c0_i32_1 = arith.constant 0 : i32
    return %c0_i32, %c0_i32_0 : i32, i32
  }
  func.func @transform_5(%arg0: i32, %arg1: i32) -> (i32, i32) {
    %c0_i32 = arith.constant 0 : i32
    %c0_i32_0 = arith.constant 0 : i32
    %c0_i32_1 = arith.constant 0 : i32
    return %c0_i32, %c0_i32_0 : i32, i32
  }
  func.func @transform_6(%arg0: i32, %arg1: i32) -> (i32, i32, i32) {
    %c0_i32 = arith.constant 0 : i32
    %c0_i32_0 = arith.constant 0 : i32
    return %arg1, %arg0, %c0_i32 : i32, i32, i32
  }
}

</mosaic_0001>

<bundles_post_ra>
// kernel: encoder_rnn_forward.1
= control target key start
LH: loop header
LB: loop body
LE: loop exit
PB: predicated region body
PF: predicated region fallthrough
CT: control target
= control target key end

     0   :  { %v3574_v1 = vmov 0   ;;  %v3576_v30 = vmov 0.0   ;;  %vm2597_vm0 = vmmov 0   ;;  %v82_v61 = vlaneseq  ;;  %s3567_s2 = inlined_call_operand.vmem [shape: bf16[128,384], index: 2, kind: input, shape index: {}]   ;;  %s3568_s1 = inlined_call_operand.vmem [shape: bf16[8,16,128], index: 1, kind: input, shape index: {}]   ;;  %s3569_s3 = inlined_call_operand.vmem [shape: bf16[128,384], index: 3, kind: input, shape index: {}]   ;;  %s3570_s0 = inlined_call_operand.vmem [shape: f32[16,128], index: 0, kind: input, shape index: {}]   ;;  %s3571_s4 = inlined_call_operand.vmem [shape: f32[1,384], index: 4, kind: input, shape index: {}]   ;;  %s3572_s5 = inlined_call_operand.vmem [shape: f32[1,128], index: 5, kind: input, shape index: {}]   ;;  %s3573_s6 = inlined_call_operand.vmem [shape: bf16[8,16,128], index: 6, kind: output, shape index: {}]  }
   0x1   :  { %v2338_v0 = vld [vmem:[%s3567_s2 + $0xac] ss:$12 sps:$4 sm:$0xff]   ;;  %305 = vmatprep.mubr.bf16.mxu0 %v3574_v1  ;;  %v2340_v2 = vld [vmem:[%s3567_s2 + $0xb0] ss:$12 sps:$4 sm:$0xff]   ;;  %v2341_v3 = vld [vmem:[%s3567_s2 + $0xa8] ss:$12 sps:$4 sm:$0xff]  }
   0x2   :  { %273 = vmatprep.subr.bf16.mxu0 %v2338_v0  ;;  %2143 = vmatprep.subr.bf16.mxu1 %v2340_v2  ;;  %v2342_v4 = vld [vmem:[%s3567_s2 + $0x94] ss:$12 sps:$4 sm:$0xff]   ;;  %v2344_v5 = vld [vmem:[%s3567_s2 + $0x98] ss:$12 sps:$4 sm:$0xff]   ;;  %v2345_v6 = vld [vmem:[%s3567_s2 + $0x90] ss:$12 sps:$4 sm:$0xff]  }
   0x3   :  { %274 = vmatpush1.bf16.msra.mxu0 %v2341_v3  ;;  %2144 = vmatpush3.bf16.msra.mxu1 %v2340_v2  ;;  %v2346_v7 = vld [vmem:[%s3567_s2 + $0x7c] ss:$12 sps:$4 sm:$0xff]   ;;  %v2348_v8 = vld [vmem:[%s3567_s2 + $0x80] ss:$12 sps:$4 sm:$0xff]   ;;  %v2349_v9 = vld [vmem:[%s3567_s2 + $0x78] ss:$12 sps:$4 sm:$0xff]  }
   0x4   :  { %275 = vmatprep.subr.bf16.mxu0 %v2342_v4  ;;  %2145 = vmatprep.subr.bf16.mxu1 %v2344_v5  ;;  %v2350_v10 = vld [vmem:[%s3567_s2 + $0x64] ss:$12 sps:$4 sm:$0xff]   ;;  %v2352_v11 = vld [vmem:[%s3567_s2 + $0x68] ss:$12 sps:$4 sm:$0xff]   ;;  %v2353_v12 = vld [vmem:[%s3567_s2 + $0x60] ss:$12 sps:$4 sm:$0xff]  }
   0x5   :  { %v2354_v13 = vld [vmem:[%s3567_s2 + $0x4c] ss:$12 sps:$4 sm:$0xff]   ;;  %v2356_v14 = vld [vmem:[%s3567_s2 + $0x50] ss:$12 sps:$4 sm:$0xff]   ;;  %v2357_v15 = vld [vmem:[%s3567_s2 + $0x48] ss:$12 sps:$4 sm:$0xff]  }
   0x6   :  { %v2358_v16 = vld [vmem:[%s3567_s2 + $0x34] ss:$12 sps:$4 sm:$0xff]   ;;  %v2360_v17 = vld [vmem:[%s3567_s2 + $0x38] ss:$12 sps:$4 sm:$0xff]   ;;  %v2361_v19 = vld [vmem:[%s3567_s2 + $0x30] ss:$12 sps:$4 sm:$0xff]  }
   0x7   :  { %276 = vmatpush1.bf16.msra.mxu0 %v2345_v6  ;;  %2146 = vmatpush3.bf16.msra.mxu1 %v2344_v5  ;;  %v2370_v18 = vld [vmem:[%s3568_s1] sm:$0xff]   ;;  %v2362_v20 = vld [vmem:[%s3567_s2 + $0x1c] ss:$12 sps:$4 sm:$0xff]   ;;  %v2712_v26 = vld [vmem:[%s3569_s3 + $0xac] ss:$12 sps:$4 sm:$0xff]   ;;  %v83_v62 = vshrl.u32 %v82_v61, 7 }
   0x8   :  { %277 = vmatprep.subr.bf16.mxu0 %v2346_v7  ;;  %2147 = vmatprep.subr.bf16.mxu1 %v2348_v8  ;;  %v2364_v21 = vld [vmem:[%s3567_s2 + $0x20] ss:$12 sps:$4 sm:$0xff]   ;;  %v2365_v22 = vld [vmem:[%s3567_s2 + $0x18] ss:$12 sps:$4 sm:$0xff]   ;;  %v2368_v24 = vld [vmem:[%s3567_s2 + $0x8] ss:$12 sps:$4 sm:$0xff]  }
   0x9   :  { %2159 = vmatprep.mubr.bf16.mxu1 %v2370_v18  ;;  %v2366_v23 = vld [vmem:[%s3567_s2 + $0x4] ss:$12 sps:$4 sm:$0xff]   ;;  %v2369_v25 = vld [vmem:[%s3567_s2] ss:$12 sps:$4 sm:$0xff]   ;;  %v2720_v28 = vld [vmem:[%s3569_s3 + $0xa8] ss:$12 sps:$4 sm:$0xff]  }
   0xa   :  { %v2371_v27 = vld [vmem:[%s3568_s1 + $0x8] sm:$0xff]   ;;  %v2725_v29 = vld [vmem:[%s3569_s3 + $0xb0] ss:$12 sps:$4 sm:$0xff]   ;;  %v2732_v31 = vld [vmem:[%s3569_s3 + $0x94] ss:$12 sps:$4 sm:$0xff]   ;;  %v92_v63 = vsub.s32 2, %v83_v62 }
   0xb   :  { %278 = vmatpush1.bf16.msra.mxu0 %v2349_v9  ;;  %2148 = vmatpush3.bf16.msra.mxu1 %v2348_v8  ;;  %v2379_v32 = vld [vmem:[%s3568_s1 + $0x10] sm:$0xff]   ;;  %v2747_v34 = vld [vmem:[%s3569_s3 + $0x98] ss:$12 sps:$4 sm:$0xff]   ;;  %v2754_v35 = vld [vmem:[%s3569_s3 + $0x7c] ss:$12 sps:$4 sm:$0xff]   ;;  %v84_v8 = vsub.s32 0, %v83_v62 }
   0xc   :  { %279 = vmatprep.subr.bf16.mxu0 %v2350_v10  ;;  %2149 = vmatprep.subr.bf16.mxu1 %v2352_v11  ;;  %v2740_v33 = vld [vmem:[%s3569_s3 + $0x90] ss:$12 sps:$4 sm:$0xff]   ;;  %v2764_v37 = vld [vmem:[%s3569_s3 + $0x78] ss:$12 sps:$4 sm:$0xff]   ;;  %v2780_v40 = vld [vmem:[%s3569_s3 + $0x80] ss:$12 sps:$4 sm:$0xff]  }
   0xd   :  { %v2380_v36 = vld [vmem:[%s3568_s1 + $0x18] sm:$0xff]   ;;  %v2771_v38 = vld [vmem:[%s3569_s3 + $0x64] ss:$12 sps:$4 sm:$0xff]   ;;  %v2786_v41 = vld [vmem:[%s3569_s3 + $0x60] ss:$12 sps:$4 sm:$0xff]  }
   0xe   :  { %v2388_v39 = vld [vmem:[%s3568_s1 + $0x20] sm:$0xff]   ;;  %v2793_v42 = vld [vmem:[%s3569_s3 + $0x4c] ss:$12 sps:$4 sm:$0xff]   ;;  %v2799_v43 = vld [vmem:[%s3569_s3 + $0x68] ss:$12 sps:$4 sm:$0xff]  }
   0xf   :  { %280 = vmatpush1.bf16.msra.mxu0 %v2353_v12  ;;  %2150 = vmatpush3.bf16.msra.mxu1 %v2352_v11  ;;  %v2389_v44 = vld [vmem:[%s3568_s1 + $0x28] sm:$0xff]   ;;  %v2815_v46 = vld [vmem:[%s3569_s3 + $0x34] ss:$12 sps:$4 sm:$0xff]   ;;  %v2824_v48 = vld [vmem:[%s3569_s3 + $0x50] ss:$12 sps:$4 sm:$0xff]   ;;  %v88_v11 = vsub.s32 1, %v83_v62 }
  0x10   :  { %281 = vmatprep.subr.bf16.mxu0 %v2354_v13  ;;  %2151 = vmatprep.subr.bf16.mxu1 %v2356_v14  ;;  %v2809_v45 = vld [vmem:[%s3569_s3 + $0x48] ss:$12 sps:$4 sm:$0xff]   ;;  %v2830_v49 = vld [vmem:[%s3569_s3 + $0x30] ss:$12 sps:$4 sm:$0xff]   ;;  %v2848_v52 = vld [vmem:[%s3569_s3 + $0x18] ss:$12 sps:$4 sm:$0xff]  }
  0x11   :  { %v2397_v47 = vld [vmem:[%s3568_s1 + $0x30] sm:$0xff]   ;;  %v2837_v50 = vld [vmem:[%s3569_s3 + $0x1c] ss:$12 sps:$4 sm:$0xff]   ;;  %v2860_v54 = vld [vmem:[%s3569_s3 + $0x38] ss:$12 sps:$4 sm:$0xff]  }
  0x12   :  { %v2398_v51 = vld [vmem:[%s3568_s1 + $0x38] sm:$0xff]   ;;  %v2855_v53 = vld [vmem:[%s3569_s3 + $0x4] ss:$12 sps:$4 sm:$0xff]   ;;  %v2866_v55 = vld [vmem:[%s3569_s3] ss:$12 sps:$4 sm:$0xff]  }
  0x13   :  { %282 = vmatpush1.bf16.msra.mxu0 %v2357_v15  ;;  %2152 = vmatpush3.bf16.msra.mxu1 %v2356_v14  ;;  %v2872_v56 = vld [vmem:[%s3570_s0] sm:$0xff]  ;;  %v2877_v57 = vld [vmem:[%s3570_s0 + $0x8] sm:$0xff] }
  0x14   :  { %283 = vmatprep.subr.bf16.mxu0 %v2358_v16  ;;  %2153 = vmatprep.subr.bf16.mxu1 %v2360_v17  ;;  %v2885_v58 = vld [vmem:[%s3569_s3 + $0x20] ss:$12 sps:$4 sm:$0xff]   ;;  %v566_v59 = vpack.c.bf16 %v2877_v57, %v2872_v56  ;;  %v2896_v60 = vld [vmem:[%s3569_s3 + $0x8] ss:$12 sps:$4 sm:$0xff]  }
  0x15   :  { %v80_v0 = vld [vmem:[%s3571_s4] sm:$0x7] }
  0x16   :  { %v2944_v2 = vrot.slane %v80_v0, %v92_v63  ;;  %v2962_v15 = vrot.slane %v80_v0, %v84_v8 }
  0x17   :  { %284 = vmatpush1.bf16.msra.mxu0 %v2361_v19  ;;  %2154 = vmatpush3.bf16.msra.mxu1 %v2360_v17 }
  0x18   :  { %285 = vmatprep.subr.bf16.mxu0 %v2362_v20  ;;  %2155 = vmatprep.subr.bf16.mxu1 %v2364_v21 }
  0x1b   :  { %286 = vmatpush1.bf16.msra.mxu0 %v2365_v22  ;;  %2156 = vmatpush3.bf16.msra.mxu1 %v2364_v21 }
  0x1c   :  { %287 = vmatprep.subr.bf16.mxu0 %v2366_v23  ;;  %2157 = vmatprep.subr.bf16.mxu1 %v2368_v24 }
  0x1f   :  { %288 = vmatpush1.bf16.msra.mxu0 %v2369_v25  ;;  %2158 = vmatpush3.bf16.msra.mxu1 %v2368_v24 }
  0x20   :  { %695 = vmatprep.subr.bf16.mxu1 %v2712_v26  ;;  %2175 = vmatprep.subr.bf16.mxu0 %v3576_v30 }
  0x22   :  { %306 = vmatmul.mubr.bf16.vlgmr.msra.gmra.mxu0 %v2370_v18  ;;  %2160 = vmatmul.mubr.bf16.vlgmr.msra.gmra.mxu1 %v2371_v27  ;;  %v2964_v18 = vrot.slane %v80_v0, %v88_v11 }
  0x23   :  { %696 = vmatpush1.bf16.msra.mxu1 %v2720_v28  ;;  %2176 = vmatpush3.bf16.msra.mxu0 %v2725_v29 }
  0x24   :  { %697 = vmatprep.subr.bf16.mxu1 %v2732_v31  ;;  %315 = vmatprep.mubr.bf16.mxu0 %v3574_v1 }
  0x25   :  { %2163 = vmatprep.mubr.bf16.mxu1 %v2379_v32  ;;  %2177 = vmatprep.subr.bf16.mxu0 %v3576_v30 }
  0x27   :  { %698 = vmatpush1.bf16.msra.mxu1 %v2740_v33  ;;  %2178 = vmatpush3.bf16.msra.mxu0 %v2747_v34 }
  0x28   :  { %699 = vmatprep.subr.bf16.mxu1 %v2754_v35  ;;  %2179 = vmatprep.subr.bf16.mxu0 %v3576_v30 }
  0x2a   :  { %316 = vmatmul.mubr.bf16.gmra.mxu0 %v2371_v27  ;;  %2164 = vmatmul.mubr.bf16.gmra.mxu1 %v2380_v36 }
  0x2b   :  { %700 = vmatpush1.bf16.msra.mxu1 %v2764_v37  ;;  %325 = vmatprep.mubr.bf16.mxu0 %v3574_v1 }
  0x2c   :  { %701 = vmatprep.subr.bf16.mxu1 %v2771_v38  ;;  %2167 = vmatprep.mubr.bf16.mxu1 %v2388_v39 }
  0x2d   :  { %2180 = vmatpush3.bf16.msra.mxu0 %v2780_v40 }
  0x2e   :  { %2181 = vmatprep.subr.bf16.mxu0 %v3576_v30 }
  0x2f   :  { %702 = vmatpush1.bf16.msra.mxu1 %v2786_v41 }
  0x30   :  { %703 = vmatprep.subr.bf16.mxu1 %v2793_v42 }
  0x31   :  { %2182 = vmatpush3.bf16.msra.mxu0 %v2799_v43 }
  0x32   :  { %326 = vmatmul.mubr.bf16.gmra.mxu0 %v2379_v32  ;;  %2168 = vmatmul.mubr.bf16.gmra.mxu1 %v2389_v44 }
  0x33   :  { %704 = vmatpush1.bf16.msra.mxu1 %v2809_v45  ;;  %335 = vmatprep.mubr.bf16.mxu0 %v3574_v1 }
  0x34   :  { %705 = vmatprep.subr.bf16.mxu1 %v2815_v46  ;;  %2171 = vmatprep.mubr.bf16.mxu1 %v2397_v47 }
  0x35   :  { %2183 = vmatprep.subr.bf16.mxu0 %v3576_v30 }
  0x36   :  { %2184 = vmatpush3.bf16.msra.mxu0 %v2824_v48 }
  0x37   :  { %706 = vmatpush1.bf16.msra.mxu1 %v2830_v49  ;;  %2185 = vmatprep.subr.bf16.mxu0 %v3576_v30 }
  0x38   :  { %707 = vmatprep.subr.bf16.mxu1 %v2837_v50 }
  0x3a   :  { %336 = vmatmul.mubr.bf16.gmra.mxu0 %v2380_v36  ;;  %2172 = vmatmul.mubr.bf16.gmra.mxu1 %v2398_v51 }
  0x3b   :  { %708 = vmatpush1.bf16.msra.mxu1 %v2848_v52  ;;  %345 = vmatprep.mubr.bf16.mxu0 %v3574_v1 }
  0x3c   :  { %709 = vmatprep.subr.bf16.mxu1 %v2855_v53  ;;  %727 = vmatprep.mubr.bf16.mxu1 %v3574_v1 }
  0x3d   :  { %2186 = vmatpush3.bf16.msra.mxu0 %v2860_v54 }
  0x3e   :  { %2187 = vmatprep.subr.bf16.mxu0 %v3576_v30 }
  0x3f   :  { %710 = vmatpush1.bf16.msra.mxu1 %v2866_v55 }
  0x40   :  { %845 = vmatprep.subr.bf16.mxu1 %v2712_v26 }
  0x41   :  { %2188 = vmatpush3.bf16.msra.mxu0 %v2885_v58 }
  0x42   :  { %346 = vmatmul.mubr.bf16.gmra.mxu0 %v2388_v39  ;;  %728 = vmatmul.mubr.bf16.vlgmr.msra.gmra.mxu1 %v566_v59 }
  0x43   :  { %355 = vmatprep.mubr.bf16.mxu0 %v3574_v1  ;;  %2189 = vmatprep.subr.bf16.mxu0 %v3576_v30 }
  0x44   :  { %846 = vmatpush1.bf16.msra.mxu1 %v2720_v28  ;;  %877 = vmatprep.mubr.bf16.mxu1 %v3574_v1 }
  0x45   :  { %2190 = vmatpush3.bf16.msra.mxu0 %v2896_v60  ;;  %847 = vmatprep.subr.bf16.mxu1 %v2732_v31 }
  0x46   :  { %2195 = vmatprep.subr.bf16.mxu0 %v3576_v30 }
  0x48   :  { %848 = vmatpush1.bf16.msra.mxu1 %v2740_v33 }
  0x49   :  { %849 = vmatprep.subr.bf16.mxu1 %v2754_v35 }
  0x4a   :  { %356 = vmatmul.mubr.bf16.gmra.mxu0 %v2389_v44 }
  0x4b   :  { %365 = vmatprep.mubr.bf16.mxu0 %v3574_v1 }
  0x4c   :  { %850 = vmatpush1.bf16.msra.mxu1 %v2764_v37 }
  0x4d   :  { %851 = vmatprep.subr.bf16.mxu1 %v2771_v38 }
  0x50   :  { %852 = vmatpush1.bf16.msra.mxu1 %v2786_v41 }
  0x51   :  { %853 = vmatprep.subr.bf16.mxu1 %v2793_v42 }
  0x52   :  { %366 = vmatmul.mubr.bf16.gmra.mxu0 %v2397_v47 }
  0x53   :  { %375 = vmatprep.mubr.bf16.mxu0 %v3574_v1 }
  0x54   :  { %854 = vmatpush1.bf16.msra.mxu1 %v2809_v45 }
  0x55   :  { %855 = vmatprep.subr.bf16.mxu1 %v2815_v46 }
  0x58   :  { %856 = vmatpush1.bf16.msra.mxu1 %v2830_v49 }
  0x59   :  { %857 = vmatprep.subr.bf16.mxu1 %v2837_v50 }
  0x5a   :  { %376 = vmatmul.mubr.bf16.gmra.mxu0 %v2398_v51 }
  0x5b   :  { %2191 = vmatprep.mubr.msk.bf16.mxu0 %vm2597_vm0, %v3576_v30 }
  0x5c   :  { %858 = vmatpush1.bf16.msra.mxu1 %v2848_v52 }
  0x5d   :  { %859 = vmatprep.subr.bf16.mxu1 %v2855_v53 }
  0x60   :  { %860 = vmatpush1.bf16.msra.mxu1 %v2866_v55 }
  0x61   :  { %991 = vmatprep.subr.bf16.mxu1 %v2712_v26 }
  0x62   :  { %2192 = vmatmul.mubr.bf16.vlgmr.msra.gmra.mxu0 %v566_v59 }
  0x63   :  { %2196 = vmatpush3.bf16.msra.mxu0 %v2725_v29  ;;  %2211 = vmatprep.mubr.msk.bf16.mxu0 %vm2597_vm0, %v3576_v30 }
  0x64   :  { %2197 = vmatprep.subr.bf16.mxu0 %v3576_v30 }
  0x67   :  { %2198 = vmatpush3.bf16.msra.mxu0 %v2747_v34 }
  0x68   :  { %2199 = vmatprep.subr.bf16.mxu0 %v3576_v30 }
  0x6b   :  { %2200 = vmatpush3.bf16.msra.mxu0 %v2780_v40 }
  0x6c   :  { %2201 = vmatprep.subr.bf16.mxu0 %v3576_v30 }
  0x6f   :  { %2202 = vmatpush3.bf16.msra.mxu0 %v2799_v43 }
  0x70   :  { %2203 = vmatprep.subr.bf16.mxu0 %v3576_v30 }
  0x73   :  { %2204 = vmatpush3.bf16.msra.mxu0 %v2824_v48 }
  0x74   :  { %2205 = vmatprep.subr.bf16.mxu0 %v3576_v30 }
  0x77   :  { %2206 = vmatpush3.bf16.msra.mxu0 %v2860_v54 }
  0x78   :  { %2207 = vmatprep.subr.bf16.mxu0 %v3576_v30 }
  0x7b   :  { %2208 = vmatpush3.bf16.msra.mxu0 %v2885_v58 }
  0x7c   :  { %2209 = vmatprep.subr.bf16.mxu0 %v3576_v30 }
  0x7f   :  { %2210 = vmatpush3.bf16.msra.mxu0 %v2896_v60 }
  0x80   :  { %2215 = vmatprep.subr.bf16.mxu0 %v3576_v30 }
  0xe2   :  { %v307_v3 = vpop.f32.mrf.mxu0  ;;  %v2161_v4 = vpop.f32.mrf.mxu1 }
  0xe3   :  { %v2947_v5 = vadd.f32 %v2161_v4, %v2944_v2 }
  0xe4   :  { %v2949_v6 = vpop.f32.mrf.mxu0  ;;  %v2951_v7 = vpop.f32.mrf.mxu1 }
  0xe6   :  { %v2953_v9 = vpop.f32.mrf.mxu0  ;;  %v2162_v10 = vpop.f32.mrf.mxu1 }
  0xe7   :  { %v2956_v12 = vadd.f32 %v2162_v10, %v2944_v2 }
  0xe8   :  { %v2958_v13 = vpop.f32.mrf.mxu0  ;;  %v2960_v14 = vpop.f32.mrf.mxu1 }
  0xea   :  { %v317_v16 = vpop.f32.mrf.mxu0  ;;  %v2165_v17 = vpop.f32.mrf.mxu1 }
  0xeb   :  { %v2967_v19 = vadd.f32 %v317_v16, %v2962_v15  ;;  %v2970_v20 = vadd.f32 %v2165_v17, %v2944_v2 }
  0xec   :  { %v319_v21 = vpop.f32.mrf.mxu0  ;;  %v436_v22 = vpop.f32.mrf.mxu1 }
  0xed   :  { %3578 = vst [vmem:[#allocation4_spill] sm:$0xff] %v2970_v20  ;;  %v2973_v23 = vadd.f32 %v319_v21, %v2964_v18  ;;  %v2976_v24 = vadd.f32 %v436_v22, %v2944_v2 }
  0xee   :  { %v321_v25 = vpop.f32.mrf.mxu0  ;;  %v2166_v27 = vpop.f32.mrf.mxu1 }
  0xef   :  { %v2979_v32 = vadd.f32 %v321_v25, %v2962_v15  ;;  %v2982_v36 = vadd.f32 %v2166_v27, %v2944_v2 }
  0xf0   :  { %v323_v39 = vpop.f32.mrf.mxu0  ;;  %v439_v44 = vpop.f32.mrf.mxu1 }
  0xf1   :  { %3579 = vst [vmem:[#allocation5_spill] sm:$0xff] %v2982_v36  ;;  %v2985_v47 = vadd.f32 %v323_v39, %v2964_v18  ;;  %v2988_v51 = vadd.f32 %v439_v44, %v2944_v2 }
  0xf2   :  { %v327_v59 = vpop.f32.mrf.mxu0  ;;  %v2169_v61 = vpop.f32.mrf.mxu1 }
  0xf3   :  { %v2991_v62 = vadd.f32 %v327_v59, %v2962_v15  ;;  %v2994_v63 = vadd.f32 %v2169_v61, %v2944_v2 }
  0xf4   :  { %v329_v0 = vpop.f32.mrf.mxu0  ;;  %v452_v4 = vpop.f32.mrf.mxu1 }
  0xf5   :  { %3580 = vst [vmem:[#allocation6_spill] sm:$0xff] %v2994_v63  ;;  %v2997_v8 = vadd.f32 %v329_v0, %v2964_v18  ;;  %v3000_v10 = vadd.f32 %v452_v4, %v2944_v2 }
  0xf6   :  { %v331_v11 = vpop.f32.mrf.mxu0  ;;  %v2170_v16 = vpop.f32.mrf.mxu1 }
  0xf7   :  { %3581 = vst [vmem:[#allocation7_spill] sm:$0xff] %v3000_v10  ;;  %v3003_v17 = vadd.f32 %v331_v11, %v2962_v15  ;;  %v3006_v21 = vadd.f32 %v2170_v16, %v2944_v2 }
  0xf8   :  { %v333_v22 = vpop.f32.mrf.mxu0  ;;  %v455_v25 = vpop.f32.mrf.mxu1 }
  0xf9   :  { %3582 = vst [vmem:[#allocation8_spill] sm:$0xff] %v3006_v21  ;;  %v3009_v27 = vadd.f32 %v333_v22, %v2964_v18  ;;  %v3012_v39 = vadd.f32 %v455_v25, %v2944_v2 }
  0xfa   :  { %v337_v44 = vpop.f32.mrf.mxu0  ;;  %v2173_v59 = vpop.f32.mrf.mxu1 }
  0xfb   :  { %3583 = vst [vmem:[#allocation9_spill] sm:$0xff] %v3012_v39  ;;  %v3015_v61 = vadd.f32 %v337_v44, %v2962_v15  ;;  %v3018_v0 = vadd.f32 %v2173_v59, %v2944_v2  ;;  %v308_v59 = vadd.f32 %v307_v3, %v2962_v15 }
  0xfc   :  { %v339_v4 = vpop.f32.mrf.mxu0  ;;  %v468_v11 = vpop.f32.mrf.mxu1 }
  0xfd   :  { %3584 = vst [vmem:[#allocation10_spill] sm:$0xff] %v3018_v0  ;;  %v3021_v16 = vadd.f32 %v339_v4, %v2964_v18  ;;  %v3024_v1 = vadd.f32 %v468_v11, %v2944_v2 }
  0xfe   :  { %v341_v22 = vpop.f32.mrf.mxu0  ;;  %v2174_v30 = vpop.f32.mrf.mxu1 }
  0xff   :  { %3585 = vst [vmem:[#allocation11_spill] sm:$0xff] %v3024_v1  ;;  %v3027_v25 = vadd.f32 %v341_v22, %v2962_v15  ;;  %v3030_v21 = vadd.f32 %v2174_v30, %v2944_v2  ;;  %v312_v30 = vadd.f32 %v2953_v9, %v2962_v15 }
 0x100   :  { %v343_v44 = vpop.f32.mrf.mxu0  ;;  %v471_v63 = vpop.f32.mrf.mxu1 }
 0x101   :  { %3586 = vst [vmem:[#allocation12_spill] sm:$0xff] %v3030_v21  ;;  %v3034_v0 = vadd.f32 %v343_v44, %v2964_v18  ;;  %v3037_v4 = vadd.f32 %v471_v63, %v2944_v2 }
 0x102   :  { %v347_v11 = vpop.f32.mrf.mxu0  ;;  %v729_v1 = vpop.f32.mrf.mxu1 }
 0x103   :  { %3587 = vst [vmem:[#allocation13_spill] sm:$0xff] %v3034_v0  ;;  %3588 = vst [vmem:[#allocation14_spill] sm:$0xff] %v3037_v4  ;;  %v3040_v39 = vadd.f32 %v347_v11, %v2962_v15  ;;  %v785_v22 = vadd.f32 %v729_v1, %v308_v59  ;;  %v310_v1 = vadd.f32 %v2949_v6, %v2964_v18 }
 0x104   :  { %v349_v10 = vpop.f32.mrf.mxu0  ;;  %v731_v36 = vpop.f32.mrf.mxu1 }
 0x105   :  { %v1929_v21 = vmul.f32 -1.442695, %v785_v22  ;;  %v3045_v3 = vadd.f32 %v349_v10, %v2964_v18  ;;  %v314_v10 = vadd.f32 %v2958_v13, %v2964_v18 }
 0x106   :  { %v351_v44 = vpop.f32.mrf.mxu0  ;;  %v733_v20 = vpop.f32.mrf.mxu1 }
 0x107   :  { %3589 = vst [vmem:[#allocation15_spill] sm:$0xff] %v3045_v3  ;;  %2410 = vpow2.f32 %v1929_v21  ;;  %v3048_v63 = vadd.f32 %v351_v44, %v2962_v15  ;;  %v787_v4 = vadd.f32 %v733_v20, %v312_v30  ;;  %v786_v3 = vadd.f32 %v731_v36, %v310_v1 }
 0x108   :  { %v353_v0 = vpop.f32.mrf.mxu0  ;;  %v735_v9 = vpop.f32.mrf.mxu1 }
 0x109   :  { %3590 = vst [vmem:[#allocation16_spill] sm:$0xff] %v3048_v63  ;;  %v1931_v59 = vmul.f32 -1.442695, %v787_v4  ;;  %v3053_v11 = vadd.f32 %v353_v0, %v2964_v18  ;;  %v788_v44 = vadd.f32 %v735_v9, %v314_v10  ;;  %v1930_v4 = vmul.f32 -1.442695, %v786_v3 }
 0x10a   :  { %v357_v22 = vpop.f32.mrf.mxu0 }
 0x10b   :  { %3591 = vst [vmem:[#allocation17_spill] sm:$0xff] %v3053_v11  ;;  %2412 = vpow2.f32 %v1931_v59  ;;  %v3058_v21 = vadd.f32 %v357_v22, %v2962_v15  ;;  %v1932_v11 = vmul.f32 -1.442695, %v788_v44 }
 0x10c   :  { %v359_v20 = vpop.f32.mrf.mxu0  ;;  %2414 = vpow2.f32 %v1930_v4 }
 0x10d   :  { %v3061_v30 = vadd.f32 %v359_v20, %v2964_v18  ;;  %2416 = vpow2.f32 %v1932_v11 }
 0x10e   :  { %v361_v6 = vpop.f32.mrf.mxu0 }
 0x10f   :  { %3592 = vst [vmem:[#allocation18_spill] sm:$0xff] %v3061_v30  ;;  %v3064_v0 = vadd.f32 %v361_v6, %v2962_v15 }
 0x110   :  { %v363_v63 = vpop.f32.mrf.mxu0 }
 0x111   :  { %3593 = vst [vmem:[#allocation19_spill] sm:$0xff] %v3064_v0  ;;  %v3067_v13 = vadd.f32 %v363_v63, %v2964_v18 }
 0x112   :  { %v367_v36 = vpop.f32.mrf.mxu0 }
 0x113   :  { %3594 = vst [vmem:[#allocation20_spill] sm:$0xff] %v3067_v13  ;;  %v3070_v1 = vadd.f32 %v367_v36, %v2962_v15 }
 0x114   :  { %v2411_v59 = vpop.eup %2410  ;;  %v369_v9 = vpop.f32.mrf.mxu0 }
 0x115   :  { %3595 = vst [vmem:[#allocation21_spill] sm:$0xff] %v3070_v1  ;;  %v801_v10 = vadd.f32 1.0, %v2411_v59  ;;  %v3073_v22 = vadd.f32 %v369_v9, %v2964_v18 }
 0x116   :  { %v371_v3 = vpop.f32.mrf.mxu0 }
 0x117   :  { %3596 = vst [vmem:[#allocation22_spill] sm:$0xff] %v3073_v22  ;;  %2418 = vrcp.f32 %v801_v10  ;;  %v3076_v44 = vadd.f32 %v371_v3, %v2962_v15 }
 0x118   :  { %v2413_v20 = vpop.eup %2412  ;;  %v373_v63 = vpop.f32.mrf.mxu0 }
 0x119   :  { %3597 = vst [vmem:[#allocation23_spill] sm:$0xff] %v3076_v44  ;;  %v803_v6 = vadd.f32 1.0, %v2413_v20  ;;  %v3079_v4 = vadd.f32 %v373_v63, %v2964_v18  ;;  %v2415_v3 = vpop.eup %2414  ;;  %v3093_v20 = vld [vmem:[%s3572_s5] ss:$0 sm:$0xff] }
 0x11a   :  { %v377_v36 = vpop.f32.mrf.mxu0  ;;  %v2417_v63 = vpop.eup %2416 }
 0x11b   :  { %3598 = vst [vmem:[#allocation24_spill] sm:$0xff] %v3079_v4  ;;  %2420 = vrcp.f32 %v803_v6  ;;  %v3082_v11 = vadd.f32 %v377_v36, %v2962_v15  ;;  %v804_v4 = vadd.f32 1.0, %v2417_v63 }
 0x11c   :  { %v379_v59 = vpop.f32.mrf.mxu0 }
 0x11d   :  { %3599 = vst [vmem:[#allocation25_spill] sm:$0xff] %v3082_v11  ;;  %v3085_v9 = vadd.f32 %v379_v59, %v2964_v18  ;;  %v802_v11 = vadd.f32 1.0, %v2415_v3 }
 0x11e   :  { %v381_v22 = vpop.f32.mrf.mxu0 }
 0x11f   :  { %3600 = vst [vmem:[#allocation26_spill] sm:$0xff] %v3085_v9  ;;  %v3088_v10 = vadd.f32 %v381_v22, %v2962_v15  ;;  %v421_v15 = vadd.f32 %v2951_v7, %v2944_v2  ;;  %2422 = vrcp.f32 %v802_v11 }
 0x120   :  { %v383_v44 = vpop.f32.mrf.mxu0  ;;  %2424 = vrcp.f32 %v804_v4 }
 0x121   :  { %3601 = vst [vmem:[#allocation27_spill] sm:$0xff] %v3088_v10  ;;  %v3096_v6 = vadd.f32 %v383_v44, %v2964_v18  ;;  %v424_v44 = vadd.f32 %v2960_v14, %v2944_v2 }
 0x122   :  { %v772_v36 = vpop.f32.mrf.mxu0 }
 0x123   :  { %3602 = vst [vmem:[#allocation28_spill] sm:$0xff] %v3096_v6  ;;  %v819_v59 = vadd.f32 %v3093_v20, %v772_v36 }
 0x124   :  { %v2419_v9 = vpop.eup %2418  ;;  %v2193_v1 = vpop.f32.mrf.mxu0 }
 0x125   :  { %v821_v22 = vmul.f32 %v2419_v9, %v819_v59 }
 0x126   :  { %v775_v10 = vpop.f32.mrf.mxu0 }
 0x127   :  { %v823_v13 = vadd.f32 %v821_v22, %v421_v15  ;;  %v820_v30 = vadd.f32 %v3093_v20, %v775_v10 }
 0x128   :  { %v2421_v0 = vpop.eup %2420  ;;  %v2194_v18 = vpop.f32.mrf.mxu0 }
 0x129   :  { %2426 = vtanh.f32 %v823_v13  ;;  %v822_v3 = vmul.f32 %v2421_v0, %v820_v30 }
 0x12b   :  { %v824_v36 = vadd.f32 %v822_v3, %v424_v44 }
 0x12c   :  { %v2423_v1 = vpop.eup %2422 }
 0x12d   :  { %2428 = vtanh.f32 %v824_v36  ;;  %v2425_v63 = vpop.eup %2424  ;;  %v827_v7 = vsub.f32 1.0, %v2423_v1  ;;  %v831_v10 = vmul.f32 %v2423_v1, %v2872_v56  ;;  %v3603_v56 = vmov 0.0  }
 0x12e   :  { %v828_v9 = vsub.f32 1.0, %v2425_v63  ;;  %v832_v4 = vmul.f32 %v2425_v63, %v2877_v57  ;;  %v3604_v57 = vmov 0  }
 0x136   :  { %v2427_v6 = vpop.eup %2426 }
 0x137   :  { %v829_v59 = vmul.f32 %v2427_v6, %v827_v7 }
 0x139   :  { %v3106_v22 = vadd.f32 %v831_v10, %v829_v59 }
 0x13a   :  { %v2429_v11 = vpop.eup %2428 }
 0x13b   :  { %v830_v15 = vmul.f32 %v2429_v11, %v828_v9 }
 0x13d   :  { %v3108_v18 = vadd.f32 %v832_v4, %v830_v15 }
 0x13f   :  { %v835_v2 = vpack.c.bf16 %v3108_v18, %v3106_v22 }
 0x141   :  { %2012 = vst [vmem:[%s3573_s6] sm:$0xff] %v835_v2   ;;  %878 = vmatmul.mubr.bf16.vlgmr.msra.gmra.mxu1 %v835_v2  ;;  %2212 = vmatmul.mubr.bf16.vlgmr.msra.gmra.mxu0 %v835_v2 }
 0x142   :  { %992 = vmatpush1.bf16.msra.mxu1 %v2720_v28  ;;  %2216 = vmatpush3.bf16.msra.mxu0 %v2725_v29 }
 0x143   :  { %993 = vmatprep.subr.bf16.mxu1 %v2732_v31  ;;  %2217 = vmatprep.subr.bf16.mxu0 %v3603_v56 }
 0x144   :  { %1023 = vmatprep.mubr.bf16.mxu1 %v3604_v57  ;;  %2231 = vmatprep.mubr.msk.bf16.mxu0 %vm2597_vm0, %v3603_v56 }
 0x146   :  { %994 = vmatpush1.bf16.msra.mxu1 %v2740_v33  ;;  %2218 = vmatpush3.bf16.msra.mxu0 %v2747_v34 }
 0x147   :  { %995 = vmatprep.subr.bf16.mxu1 %v2754_v35  ;;  %2219 = vmatprep.subr.bf16.mxu0 %v3603_v56 }
 0x14a   :  { %996 = vmatpush1.bf16.msra.mxu1 %v2764_v37  ;;  %2220 = vmatpush3.bf16.msra.mxu0 %v2780_v40 }
 0x14b   :  { %997 = vmatprep.subr.bf16.mxu1 %v2771_v38  ;;  %2221 = vmatprep.subr.bf16.mxu0 %v3603_v56 }
 0x14e   :  { %998 = vmatpush1.bf16.msra.mxu1 %v2786_v41  ;;  %2222 = vmatpush3.bf16.msra.mxu0 %v2799_v43 }
 0x14f   :  { %999 = vmatprep.subr.bf16.mxu1 %v2793_v42  ;;  %2223 = vmatprep.subr.bf16.mxu0 %v3603_v56 }
 0x152   :  { %1000 = vmatpush1.bf16.msra.mxu1 %v2809_v45  ;;  %2224 = vmatpush3.bf16.msra.mxu0 %v2824_v48 }
 0x153   :  { %1001 = vmatprep.subr.bf16.mxu1 %v2815_v46  ;;  %2225 = vmatprep.subr.bf16.mxu0 %v3603_v56 }
 0x156   :  { %1002 = vmatpush1.bf16.msra.mxu1 %v2830_v49  ;;  %2226 = vmatpush3.bf16.msra.mxu0 %v2860_v54 }
 0x157   :  { %1003 = vmatprep.subr.bf16.mxu1 %v2837_v50  ;;  %2227 = vmatprep.subr.bf16.mxu0 %v3603_v56 }
 0x15a   :  { %1004 = vmatpush1.bf16.msra.mxu1 %v2848_v52  ;;  %2228 = vmatpush3.bf16.msra.mxu0 %v2885_v58 }
 0x15b   :  { %1005 = vmatprep.subr.bf16.mxu1 %v2855_v53  ;;  %2229 = vmatprep.subr.bf16.mxu0 %v3603_v56 }
 0x15e   :  { %1006 = vmatpush1.bf16.msra.mxu1 %v2866_v55  ;;  %2230 = vmatpush3.bf16.msra.mxu0 %v2896_v60 }
 0x15f   :  { %1137 = vmatprep.subr.bf16.mxu1 %v2712_v26  ;;  %2235 = vmatprep.subr.bf16.mxu0 %v3603_v56 }
 0x201   :  { %v879_v14 = vpop.f32.mrf.mxu1  ;;  %v922_v30 = vpop.f32.mrf.mxu0 }
 0x202   :  { %v936_v0 = vadd.f32 %v879_v14, %v2967_v19 }
 0x203   :  { %v881_v13 = vpop.f32.mrf.mxu1  ;;  %v2213_v6 = vpop.f32.mrf.mxu0 }
 0x204   :  { %v1936_v44 = vmul.f32 -1.442695, %v936_v0  ;;  %v937_v7 = vadd.f32 %v881_v13, %v2973_v23  ;;  %v964_v23 = vadd.f32 %v3093_v20, %v922_v30 }
 0x205   :  { %v883_v3 = vpop.f32.mrf.mxu1  ;;  %v925_v36 = vpop.f32.mrf.mxu0 }
 0x206   :  { %2430 = vpow2.f32 %v1936_v44  ;;  %v938_v1 = vadd.f32 %v883_v3, %v2979_v32  ;;  %v1937_v15 = vmul.f32 -1.442695, %v937_v7 }
 0x207   :  { %v2214_v63 = vpop.f32.mrf.mxu0  ;;  %v885_v59 = vpop.f32.mrf.mxu1 }
 0x208   :  { %v1938_v9 = vmul.f32 -1.442695, %v938_v1  ;;  %v939_v11 = vadd.f32 %v885_v59, %v2985_v47  ;;  %v965_v1 = vadd.f32 %v3093_v20, %v925_v36 }
 0x20a   :  { %2432 = vpow2.f32 %v1938_v9  ;;  %v1939_v10 = vmul.f32 -1.442695, %v939_v11 }
 0x20b   :  { %2434 = vpow2.f32 %v1937_v15 }
 0x20c   :  { %2436 = vpow2.f32 %v1939_v10 }
 0x213   :  { %v2431_v19 = vpop.eup %2430 }
 0x214   :  { %v952_v4 = vadd.f32 1.0, %v2431_v19 }
 0x216   :  { %2438 = vrcp.f32 %v952_v4 }
 0x217   :  { %v2433_v2 = vpop.eup %2432 }
 0x218   :  { %v954_v14 = vadd.f32 1.0, %v2433_v2  ;;  %v2435_v0 = vpop.eup %2434 }
 0x219   :  { %v2437_v32 = vpop.eup %2436  ;;  %v953_v6 = vadd.f32 1.0, %v2435_v0 }
 0x21a   :  { %2440 = vrcp.f32 %v954_v14  ;;  %v955_v44 = vadd.f32 1.0, %v2437_v32 }
 0x21b   :  { %2442 = vrcp.f32 %v953_v6 }
 0x21c   :  { %2444 = vrcp.f32 %v955_v44 }
 0x223   :  { %v2439_v13 = vpop.eup %2438 }
 0x224   :  { %v966_v3 = vmul.f32 %v2439_v13, %v964_v23 }
 0x226   :  { %v968_v47 = vadd.f32 %v966_v3, %v2947_v5 }
 0x227   :  { %v2441_v63 = vpop.eup %2440 }
 0x228   :  { %2446 = vtanh.f32 %v968_v47  ;;  %v967_v7 = vmul.f32 %v2441_v63, %v965_v1  ;;  %v2443_v59 = vpop.eup %2442 }
 0x229   :  { %v2445_v11 = vpop.eup %2444  ;;  %v972_v15 = vsub.f32 1.0, %v2443_v59  ;;  %v976_v19 = vmul.f32 %v2443_v59, %v3106_v22 }
 0x22a   :  { %v969_v9 = vadd.f32 %v967_v7, %v2956_v12  ;;  %v973_v4 = vsub.f32 1.0, %v2445_v11  ;;  %v977_v36 = vmul.f32 %v2445_v11, %v3108_v18 }
 0x22c   :  { %2448 = vtanh.f32 %v969_v9 }
 0x235   :  { %v2447_v10 = vpop.eup %2446 }
 0x236   :  { %v974_v30 = vmul.f32 %v2447_v10, %v972_v15 }
 0x238   :  { %v3159_v2 = vadd.f32 %v976_v19, %v974_v30 }
 0x239   :  { %v2449_v5 = vpop.eup %2448 }
 0x23a   :  { %v975_v14 = vmul.f32 %v2449_v5, %v973_v4 }
 0x23c   :  { %v3162_v0 = vadd.f32 %v977_v36, %v975_v14 }
 0x23e   :  { %v980_v12 = vpack.c.bf16 %v3162_v0, %v3159_v2 }
 0x240   :  { %2048 = vst [vmem:[%s3573_s6 + $0x8] sm:$0xff] %v980_v12   ;;  %1024 = vmatmul.mubr.bf16.vlgmr.msra.gmra.mxu1 %v980_v12  ;;  %2232 = vmatmul.mubr.bf16.vlgmr.msra.gmra.mxu0 %v980_v12 }
 0x241   :  { %1138 = vmatpush1.bf16.msra.mxu1 %v2720_v28  ;;  %2236 = vmatpush3.bf16.msra.mxu0 %v2725_v29 }
 0x242   :  { %1139 = vmatprep.subr.bf16.mxu1 %v2732_v31  ;;  %2237 = vmatprep.subr.bf16.mxu0 %v3603_v56 }
 0x243   :  { %1169 = vmatprep.mubr.bf16.mxu1 %v3604_v57  ;;  %2251 = vmatprep.mubr.msk.bf16.mxu0 %vm2597_vm0, %v3603_v56 }
 0x245   :  { %1140 = vmatpush1.bf16.msra.mxu1 %v2740_v33  ;;  %2238 = vmatpush3.bf16.msra.mxu0 %v2747_v34 }
 0x246   :  { %1141 = vmatprep.subr.bf16.mxu1 %v2754_v35  ;;  %2239 = vmatprep.subr.bf16.mxu0 %v3603_v56 }
 0x249   :  { %1142 = vmatpush1.bf16.msra.mxu1 %v2764_v37  ;;  %2240 = vmatpush3.bf16.msra.mxu0 %v2780_v40 }
 0x24a   :  { %1143 = vmatprep.subr.bf16.mxu1 %v2771_v38  ;;  %2241 = vmatprep.subr.bf16.mxu0 %v3603_v56 }
 0x24d   :  { %1144 = vmatpush1.bf16.msra.mxu1 %v2786_v41  ;;  %2242 = vmatpush3.bf16.msra.mxu0 %v2799_v43 }
 0x24e   :  { %1145 = vmatprep.subr.bf16.mxu1 %v2793_v42  ;;  %2243 = vmatprep.subr.bf16.mxu0 %v3603_v56 }
 0x251   :  { %1146 = vmatpush1.bf16.msra.mxu1 %v2809_v45  ;;  %2244 = vmatpush3.bf16.msra.mxu0 %v2824_v48 }
 0x252   :  { %1147 = vmatprep.subr.bf16.mxu1 %v2815_v46  ;;  %2245 = vmatprep.subr.bf16.mxu0 %v3603_v56 }
 0x255   :  { %1148 = vmatpush1.bf16.msra.mxu1 %v2830_v49  ;;  %2246 = vmatpush3.bf16.msra.mxu0 %v2860_v54 }
 0x256   :  { %1149 = vmatprep.subr.bf16.mxu1 %v2837_v50  ;;  %2247 = vmatprep.subr.bf16.mxu0 %v3603_v56 }
 0x259   :  { %1150 = vmatpush1.bf16.msra.mxu1 %v2848_v52  ;;  %2248 = vmatpush3.bf16.msra.mxu0 %v2885_v58 }
 0x25a   :  { %1151 = vmatprep.subr.bf16.mxu1 %v2855_v53  ;;  %2249 = vmatprep.subr.bf16.mxu0 %v3603_v56 }
 0x25d   :  { %1152 = vmatpush1.bf16.msra.mxu1 %v2866_v55  ;;  %2250 = vmatpush3.bf16.msra.mxu0 %v2896_v60 }
 0x25e   :  { %1283 = vmatprep.subr.bf16.mxu1 %v2712_v26  ;;  %2255 = vmatprep.subr.bf16.mxu0 %v3603_v56 }
 0x300   :  { %v1025_v22 = vpop.f32.mrf.mxu1  ;;  %v1068_v18 = vpop.f32.mrf.mxu0 }
 0x301   :  { %v1082_v32 = vadd.f32 %v1025_v22, %v2991_v62 }
 0x302   :  { %v1027_v6 = vpop.f32.mrf.mxu1  ;;  %v2233_v23 = vpop.f32.mrf.mxu0 }
 0x303   :  { %v1944_v13 = vmul.f32 -1.442695, %v1082_v32  ;;  %v1083_v63 = vadd.f32 %v1027_v6, %v2997_v8  ;;  %v1110_v8 = vadd.f32 %v3093_v20, %v1068_v18 }
 0x304   :  { %v1029_v44 = vpop.f32.mrf.mxu1  ;;  %v1071_v3 = vpop.f32.mrf.mxu0 }
 0x305   :  { %2450 = vpow2.f32 %v1944_v13  ;;  %v1084_v47 = vadd.f32 %v1029_v44, %v3003_v17  ;;  %v1945_v59 = vmul.f32 -1.442695, %v1083_v63  ;;  %v1111_v12 = vadd.f32 %v3093_v20, %v1071_v3 }
 0x306   :  { %v2234_v1 = vpop.f32.mrf.mxu0  ;;  %v1031_v9 = vpop.f32.mrf.mxu1 }
 0x307   :  { %v1946_v7 = vmul.f32 -1.442695, %v1084_v47  ;;  %v1085_v26 = vadd.f32 %v1031_v9, %v3009_v27 }
 0x309   :  { %2452 = vpow2.f32 %v1946_v7  ;;  %v1947_v11 = vmul.f32 -1.442695, %v1085_v26 }
 0x30a   :  { %2454 = vpow2.f32 %v1945_v59 }
 0x30b   :  { %2456 = vpow2.f32 %v1947_v11  ;;  %v3606_v11 = vld [vmem:[#allocation4_spill] sm:$0xff] }
 0x312   :  { %v2451_v62 = vpop.eup %2450 }
 0x313   :  { %v1098_v15 = vadd.f32 1.0, %v2451_v62 }
 0x315   :  { %2458 = vrcp.f32 %v1098_v15 }
 0x316   :  { %v2453_v10 = vpop.eup %2452 }
 0x317   :  { %v1100_v30 = vadd.f32 1.0, %v2453_v10  ;;  %v2455_v19 = vpop.eup %2454 }
 0x318   :  { %v2457_v17 = vpop.eup %2456  ;;  %v1099_v4 = vadd.f32 1.0, %v2455_v19  ;;  %v3607_v19 = vld [vmem:[#allocation5_spill] sm:$0xff] }
 0x319   :  { %2460 = vrcp.f32 %v1100_v30  ;;  %v1101_v14 = vadd.f32 1.0, %v2457_v17 }
 0x31a   :  { %2462 = vrcp.f32 %v1099_v4 }
 0x31b   :  { %2464 = vrcp.f32 %v1101_v14 }
 0x322   :  { %v2459_v5 = vpop.eup %2458 }
 0x323   :  { %v1112_v36 = vmul.f32 %v2459_v5, %v1110_v8 }
 0x325   :  { %v1114_v27 = vadd.f32 %v1112_v36, %v2976_v24 }
 0x326   :  { %v2461_v22 = vpop.eup %2460 }
 0x327   :  { %2466 = vtanh.f32 %v1114_v27  ;;  %v1113_v32 = vmul.f32 %v2461_v22, %v1111_v12  ;;  %v2463_v23 = vpop.eup %2462 }
 0x328   :  { %v2465_v13 = vpop.eup %2464  ;;  %v1118_v44 = vsub.f32 1.0, %v2463_v23  ;;  %v1122_v1 = vmul.f32 %v2463_v23, %v3159_v2 }
 0x329   :  { %v1115_v6 = vadd.f32 %v1113_v32, %v2988_v51  ;;  %v1119_v63 = vsub.f32 1.0, %v2465_v13  ;;  %v1123_v3 = vmul.f32 %v2465_v13, %v3162_v0 }
 0x32b   :  { %2468 = vtanh.f32 %v1115_v6 }
 0x334   :  { %v2467_v47 = vpop.eup %2466 }
 0x335   :  { %v1120_v18 = vmul.f32 %v2467_v47, %v1118_v44  ;;  %v3285_v47 = vld [vmem:[%s3569_s3 + $0xa8] ss:$12 sps:$4 sm:$0xff]  }
 0x337   :  { %v3213_v7 = vadd.f32 %v1122_v1, %v1120_v18  ;;  %v3291_v18 = vld [vmem:[%s3569_s3 + $0xb0] ss:$12 sps:$4 sm:$0xff]   ;;  %v3297_v1 = vld [vmem:[%s3569_s3 + $0x94] ss:$12 sps:$4 sm:$0xff]  }
 0x338   :  { %v2469_v24 = vpop.eup %2468 }
 0x339   :  { %v1121_v9 = vmul.f32 %v2469_v24, %v1119_v63  ;;  %v3307_v63 = vld [vmem:[%s3569_s3 + $0x90] ss:$12 sps:$4 sm:$0xff]  }
 0x33a   :  { %v3319_v24 = vld [vmem:[%s3569_s3 + $0x7c] ss:$12 sps:$4 sm:$0xff]  }
 0x33b   :  { %v3216_v26 = vadd.f32 %v1123_v3, %v1121_v9  ;;  %v3326_v9 = vld [vmem:[%s3569_s3 + $0x78] ss:$12 sps:$4 sm:$0xff]   ;;  %v3332_v3 = vld [vmem:[%s3569_s3 + $0x80] ss:$12 sps:$4 sm:$0xff]  }
 0x33d   :  { %v1126_v51 = vpack.c.bf16 %v3216_v26, %v3213_v7 }
 0x33f   :  { %2049 = vst [vmem:[%s3573_s6 + $0x10] sm:$0xff] %v1126_v51   ;;  %1170 = vmatmul.mubr.bf16.vlgmr.msra.gmra.mxu1 %v1126_v51  ;;  %2252 = vmatmul.mubr.bf16.vlgmr.msra.gmra.mxu0 %v1126_v51  ;;  %v3345_v51 = vld [vmem:[%s3569_s3 + $0x60] ss:$12 sps:$4 sm:$0xff]  }
 0x340   :  { %1284 = vmatpush1.bf16.msra.mxu1 %v2720_v28  ;;  %2256 = vmatpush3.bf16.msra.mxu0 %v2725_v29  ;;  %v3259_v28 = vld [vmem:[%s3569_s3 + $0xac] ss:$12 sps:$4 sm:$0xff]  }
 0x341   :  { %1285 = vmatprep.subr.bf16.mxu1 %v2732_v31  ;;  %2257 = vmatprep.subr.bf16.mxu0 %v3603_v56 }
 0x342   :  { %1315 = vmatprep.mubr.bf16.mxu1 %v3604_v57  ;;  %2271 = vmatprep.mubr.msk.bf16.mxu0 %vm2597_vm0, %v3603_v56 }
 0x344   :  { %1286 = vmatpush1.bf16.msra.mxu1 %v2740_v33  ;;  %2258 = vmatpush3.bf16.msra.mxu0 %v2747_v34 }
 0x345   :  { %1287 = vmatprep.subr.bf16.mxu1 %v2754_v35  ;;  %2259 = vmatprep.subr.bf16.mxu0 %v3603_v56 }
 0x348   :  { %1288 = vmatpush1.bf16.msra.mxu1 %v2764_v37  ;;  %2260 = vmatpush3.bf16.msra.mxu0 %v2780_v40 }
 0x349   :  { %1289 = vmatprep.subr.bf16.mxu1 %v2771_v38  ;;  %2261 = vmatprep.subr.bf16.mxu0 %v3603_v56 }
 0x34c   :  { %1290 = vmatpush1.bf16.msra.mxu1 %v2786_v41  ;;  %2262 = vmatpush3.bf16.msra.mxu0 %v2799_v43 }
 0x34d   :  { %1291 = vmatprep.subr.bf16.mxu1 %v2793_v42  ;;  %2263 = vmatprep.subr.bf16.mxu0 %v3603_v56 }
 0x350   :  { %1292 = vmatpush1.bf16.msra.mxu1 %v2809_v45  ;;  %2264 = vmatpush3.bf16.msra.mxu0 %v2824_v48  ;;  %v3605_v48 = vld [vmem:[#allocation13_spill] sm:$0xff] }
 0x351   :  { %1293 = vmatprep.subr.bf16.mxu1 %v2815_v46  ;;  %2265 = vmatprep.subr.bf16.mxu0 %v3603_v56 }
 0x354   :  { %1294 = vmatpush1.bf16.msra.mxu1 %v2830_v49  ;;  %2266 = vmatpush3.bf16.msra.mxu0 %v2860_v54 }
 0x355   :  { %1295 = vmatprep.subr.bf16.mxu1 %v2837_v50  ;;  %2267 = vmatprep.subr.bf16.mxu0 %v3603_v56 }
 0x358   :  { %1296 = vmatpush1.bf16.msra.mxu1 %v2848_v52  ;;  %2268 = vmatpush3.bf16.msra.mxu0 %v2885_v58 }
 0x359   :  { %1297 = vmatprep.subr.bf16.mxu1 %v2855_v53  ;;  %2269 = vmatprep.subr.bf16.mxu0 %v3603_v56 }
 0x35c   :  { %1298 = vmatpush1.bf16.msra.mxu1 %v2866_v55  ;;  %2270 = vmatpush3.bf16.msra.mxu0 %v2896_v60 }
 0x35d   :  { %1429 = vmatprep.subr.bf16.mxu1 %v3259_v28  ;;  %2275 = vmatprep.subr.bf16.mxu0 %v3603_v56 }
 0x3ff   :  { %v1171_v29 = vpop.f32.mrf.mxu1  ;;  %v1214_v31 = vpop.f32.mrf.mxu0 }
 0x400   :  { %v1228_v33 = vadd.f32 %v1171_v29, %v3015_v61  ;;  %v3351_v29 = vld [vmem:[%s3569_s3 + $0x68] ss:$12 sps:$4 sm:$0xff]  }
 0x401   :  { %v1173_v34 = vpop.f32.mrf.mxu1  ;;  %v2253_v35 = vpop.f32.mrf.mxu0 }
 0x402   :  { %v1952_v37 = vmul.f32 -1.442695, %v1228_v33  ;;  %v1229_v43 = vadd.f32 %v1173_v34, %v3021_v16  ;;  %v1256_v16 = vadd.f32 %v3093_v20, %v1214_v31  ;;  %v3357_v31 = vld [vmem:[%s3569_s3 + $0x4c] ss:$12 sps:$4 sm:$0xff]   ;;  %v3364_v33 = vld [vmem:[%s3569_s3 + $0x48] ss:$12 sps:$4 sm:$0xff]  }
 0x403   :  { %v1175_v38 = vpop.f32.mrf.mxu1  ;;  %v1217_v40 = vpop.f32.mrf.mxu0  ;;  %v3370_v34 = vld [vmem:[%s3569_s3 + $0x50] ss:$12 sps:$4 sm:$0xff]   ;;  %v3376_v35 = vld [vmem:[%s3569_s3 + $0x34] ss:$12 sps:$4 sm:$0xff]  }
 0x404   :  { %2470 = vpow2.f32 %v1952_v37  ;;  %v1230_v41 = vadd.f32 %v1175_v38, %v3027_v25  ;;  %v1953_v50 = vmul.f32 -1.442695, %v1229_v43  ;;  %v1257_v15 = vadd.f32 %v3093_v20, %v1217_v40  ;;  %v3383_v37 = vld [vmem:[%s3569_s3 + $0x30] ss:$12 sps:$4 sm:$0xff]   ;;  %v3389_v38 = vld [vmem:[%s3569_s3 + $0x38] ss:$12 sps:$4 sm:$0xff]  }
 0x405   :  { %v2254_v42 = vpop.f32.mrf.mxu0  ;;  %v1177_v46 = vpop.f32.mrf.mxu1  ;;  %v3395_v40 = vld [vmem:[%s3569_s3 + $0x1c] ss:$12 sps:$4 sm:$0xff]   ;;  %v3414_v43 = vld [vmem:[%s3569_s3 + $0x4] ss:$12 sps:$4 sm:$0xff]  }
 0x406   :  { %v1954_v45 = vmul.f32 -1.442695, %v1230_v41  ;;  %v1231_v49 = vadd.f32 %v1177_v46, %v3605_v48  ;;  %v3402_v41 = vld [vmem:[%s3569_s3 + $0x18] ss:$12 sps:$4 sm:$0xff]   ;;  %v3408_v42 = vld [vmem:[%s3569_s3 + $0x20] ss:$12 sps:$4 sm:$0xff]  }
 0x407   :  { %v3427_v46 = vld [vmem:[%s3569_s3 + $0x8] ss:$12 sps:$4 sm:$0xff]  }
 0x408   :  { %2472 = vpow2.f32 %v1954_v45  ;;  %v1955_v52 = vmul.f32 -1.442695, %v1231_v49  ;;  %v3421_v45 = vld [vmem:[%s3569_s3] ss:$12 sps:$4 sm:$0xff]  }
 0x409   :  { %2474 = vpow2.f32 %v1953_v50 }
 0x40a   :  { %2476 = vpow2.f32 %v1955_v52 }
 0x411   :  { %v2471_v53 = vpop.eup %2470 }
 0x412   :  { %v1244_v54 = vadd.f32 1.0, %v2471_v53 }
 0x414   :  { %2478 = vrcp.f32 %v1244_v54 }
 0x415   :  { %v2473_v55 = vpop.eup %2472 }
 0x416   :  { %v1246_v58 = vadd.f32 1.0, %v2473_v55  ;;  %v2475_v60 = vpop.eup %2474 }
 0x417   :  { %v2477_v61 = vpop.eup %2476  ;;  %v1245_v25 = vadd.f32 1.0, %v2475_v60  ;;  %v3608_v60 = vld [vmem:[#allocation16_spill] sm:$0xff] }
 0x418   :  { %2480 = vrcp.f32 %v1246_v58  ;;  %v1247_v0 = vadd.f32 1.0, %v2477_v61 }
 0x419   :  { %2482 = vrcp.f32 %v1245_v25 }
 0x41a   :  { %2484 = vrcp.f32 %v1247_v0 }
 0x421   :  { %v2479_v2 = vpop.eup %2478 }
 0x422   :  { %v1258_v59 = vmul.f32 %v2479_v2, %v1256_v16  ;;  %v3609_v16 = vld [vmem:[#allocation15_spill] sm:$0xff] }
 0x424   :  { %v1260_v62 = vadd.f32 %v1258_v59, %v3606_v11  ;;  %v3610_v11 = vld [vmem:[#allocation17_spill] sm:$0xff] }
 0x425   :  { %v2481_v10 = vpop.eup %2480 }
 0x426   :  { %2486 = vtanh.f32 %v1260_v62  ;;  %v1259_v30 = vmul.f32 %v2481_v10, %v1257_v15  ;;  %v2483_v4 = vpop.eup %2482 }
 0x427   :  { %v2485_v8 = vpop.eup %2484  ;;  %v1264_v5 = vsub.f32 1.0, %v2483_v4  ;;  %v1268_v27 = vmul.f32 %v2483_v4, %v3213_v7  ;;  %v3313_v7 = vld [vmem:[%s3569_s3 + $0x98] ss:$12 sps:$4 sm:$0xff]  }
 0x428   :  { %v1261_v17 = vadd.f32 %v1259_v30, %v3607_v19  ;;  %v1265_v12 = vsub.f32 1.0, %v2485_v8  ;;  %v1269_v23 = vmul.f32 %v2485_v8, %v3216_v26  ;;  %v3338_v26 = vld [vmem:[%s3569_s3 + $0x64] ss:$12 sps:$4 sm:$0xff]  }
 0x42a   :  { %2488 = vtanh.f32 %v1261_v17 }
 0x433   :  { %v2487_v14 = vpop.eup %2486 }
 0x434   :  { %v1266_v36 = vmul.f32 %v2487_v14, %v1264_v5 }
 0x436   :  { %v3272_v22 = vadd.f32 %v1268_v27, %v1266_v36 }
 0x437   :  { %v2489_v32 = vpop.eup %2488 }
 0x438   :  { %v1267_v6 = vmul.f32 %v2489_v32, %v1265_v12  ;;  %v3611_v32 = vld [vmem:[#allocation7_spill] sm:$0xff] }
 0x43a   :  { %v3275_v13 = vadd.f32 %v1269_v23, %v1267_v6 }
 0x43c   :  { %v1272_v44 = vpack.c.bf16 %v3275_v13, %v3272_v22 }
 0x43e   :  { %2050 = vst [vmem:[%s3573_s6 + $0x18] sm:$0xff] %v1272_v44   ;;  %1316 = vmatmul.mubr.bf16.vlgmr.msra.gmra.mxu1 %v1272_v44  ;;  %2272 = vmatmul.mubr.bf16.vlgmr.msra.gmra.mxu0 %v1272_v44 }
 0x43f   :  { %1430 = vmatpush1.bf16.msra.mxu1 %v3285_v47  ;;  %2276 = vmatpush3.bf16.msra.mxu0 %v3291_v18 }
 0x440   :  { %1431 = vmatprep.subr.bf16.mxu1 %v3297_v1  ;;  %2277 = vmatprep.subr.bf16.mxu0 %v3603_v56 }
 0x441   :  { %1461 = vmatprep.mubr.bf16.mxu1 %v3604_v57  ;;  %2291 = vmatprep.mubr.msk.bf16.mxu0 %vm2597_vm0, %v3603_v56 }
 0x443   :  { %1432 = vmatpush1.bf16.msra.mxu1 %v3307_v63  ;;  %2278 = vmatpush3.bf16.msra.mxu0 %v3313_v7 }
 0x444   :  { %1433 = vmatprep.subr.bf16.mxu1 %v3319_v24  ;;  %2279 = vmatprep.subr.bf16.mxu0 %v3603_v56 }
 0x447   :  { %1434 = vmatpush1.bf16.msra.mxu1 %v3326_v9  ;;  %2280 = vmatpush3.bf16.msra.mxu0 %v3332_v3 }
 0x448   :  { %1435 = vmatprep.subr.bf16.mxu1 %v3338_v26  ;;  %2281 = vmatprep.subr.bf16.mxu0 %v3603_v56 }
 0x44b   :  { %1436 = vmatpush1.bf16.msra.mxu1 %v3345_v51  ;;  %2282 = vmatpush3.bf16.msra.mxu0 %v3351_v29 }
 0x44c   :  { %1437 = vmatprep.subr.bf16.mxu1 %v3357_v31  ;;  %2283 = vmatprep.subr.bf16.mxu0 %v3603_v56 }
 0x44f   :  { %1438 = vmatpush1.bf16.msra.mxu1 %v3364_v33  ;;  %2284 = vmatpush3.bf16.msra.mxu0 %v3370_v34 }
 0x450   :  { %1439 = vmatprep.subr.bf16.mxu1 %v3376_v35  ;;  %2285 = vmatprep.subr.bf16.mxu0 %v3603_v56 }
 0x453   :  { %1440 = vmatpush1.bf16.msra.mxu1 %v3383_v37  ;;  %2286 = vmatpush3.bf16.msra.mxu0 %v3389_v38 }
 0x454   :  { %1441 = vmatprep.subr.bf16.mxu1 %v3395_v40  ;;  %2287 = vmatprep.subr.bf16.mxu0 %v3603_v56 }
 0x457   :  { %1442 = vmatpush1.bf16.msra.mxu1 %v3402_v41  ;;  %2288 = vmatpush3.bf16.msra.mxu0 %v3408_v42 }
 0x458   :  { %1443 = vmatprep.subr.bf16.mxu1 %v3414_v43  ;;  %2289 = vmatprep.subr.bf16.mxu0 %v3603_v56 }
 0x45b   :  { %1444 = vmatpush1.bf16.msra.mxu1 %v3421_v45  ;;  %2290 = vmatpush3.bf16.msra.mxu0 %v3427_v46 }
 0x45c   :  { %1575 = vmatprep.subr.bf16.mxu1 %v3259_v28  ;;  %2295 = vmatprep.subr.bf16.mxu0 %v3603_v56 }
 0x4fe   :  { %v1317_v48 = vpop.f32.mrf.mxu1  ;;  %v1360_v49 = vpop.f32.mrf.mxu0 }
 0x4ff   :  { %v1374_v50 = vadd.f32 %v1317_v48, %v3040_v39  ;;  %v1402_v14 = vadd.f32 %v3093_v20, %v1360_v49 }
 0x500   :  { %v1319_v52 = vpop.f32.mrf.mxu1  ;;  %v2273_v53 = vpop.f32.mrf.mxu0 }
 0x501   :  { %v1960_v54 = vmul.f32 -1.442695, %v1374_v50  ;;  %v1375_v2 = vadd.f32 %v1319_v52, %v3609_v16  ;;  %v3612_v50 = vld [vmem:[#allocation9_spill] sm:$0xff] }
 0x502   :  { %v1321_v55 = vpop.f32.mrf.mxu1  ;;  %v1363_v58 = vpop.f32.mrf.mxu0 }
 0x503   :  { %2490 = vpow2.f32 %v1960_v54  ;;  %v1376_v61 = vadd.f32 %v1321_v55, %v3608_v60  ;;  %v1961_v15 = vmul.f32 -1.442695, %v1375_v2  ;;  %v1403_v23 = vadd.f32 %v3093_v20, %v1363_v58 }
 0x504   :  { %v2274_v25 = vpop.f32.mrf.mxu0  ;;  %v1323_v59 = vpop.f32.mrf.mxu1 }
 0x505   :  { %v1962_v0 = vmul.f32 -1.442695, %v1376_v61  ;;  %v1377_v62 = vadd.f32 %v1323_v59, %v3610_v11 }
 0x507   :  { %2492 = vpow2.f32 %v1962_v0  ;;  %v1963_v10 = vmul.f32 -1.442695, %v1377_v62 }
 0x508   :  { %2494 = vpow2.f32 %v1961_v15 }
 0x509   :  { %2496 = vpow2.f32 %v1963_v10 }
 0x510   :  { %v2491_v39 = vpop.eup %2490 }
 0x511   :  { %v1390_v30 = vadd.f32 1.0, %v2491_v39 }
 0x513   :  { %2498 = vrcp.f32 %v1390_v30 }
 0x514   :  { %v2493_v19 = vpop.eup %2492 }
 0x515   :  { %v1392_v17 = vadd.f32 1.0, %v2493_v19  ;;  %v2495_v4 = vpop.eup %2494 }
 0x516   :  { %v2497_v8 = vpop.eup %2496  ;;  %v1391_v5 = vadd.f32 1.0, %v2495_v4 }
 0x517   :  { %2500 = vrcp.f32 %v1392_v17  ;;  %v1393_v27 = vadd.f32 1.0, %v2497_v8  ;;  %v3613_v17 = vld [vmem:[#allocation19_spill] sm:$0xff] }
 0x518   :  { %2502 = vrcp.f32 %v1391_v5  ;;  %v3614_v5 = vld [vmem:[#allocation18_spill] sm:$0xff] }
 0x519   :  { %2504 = vrcp.f32 %v1393_v27 }
 0x520   :  { %v2499_v36 = vpop.eup %2498 }
 0x521   :  { %v1404_v12 = vmul.f32 %v2499_v36, %v1402_v14 }
 0x523   :  { %v1406_v6 = vadd.f32 %v1404_v12, %v3611_v32 }
 0x524   :  { %v2501_v44 = vpop.eup %2500 }
 0x525   :  { %2506 = vtanh.f32 %v1406_v6  ;;  %v1405_v48 = vmul.f32 %v2501_v44, %v1403_v23  ;;  %v2503_v53 = vpop.eup %2502 }
 0x526   :  { %v2505_v54 = vpop.eup %2504  ;;  %v1410_v55 = vsub.f32 1.0, %v2503_v53  ;;  %v1414_v61 = vmul.f32 %v2503_v53, %v3272_v22 }
 0x527   :  { %v1407_v52 = vadd.f32 %v1405_v48, %v3612_v50  ;;  %v1411_v25 = vsub.f32 1.0, %v2505_v54  ;;  %v1415_v58 = vmul.f32 %v2505_v54, %v3275_v13 }
 0x529   :  { %2508 = vtanh.f32 %v1407_v52 }
 0x532   :  { %v2507_v60 = vpop.eup %2506 }
 0x533   :  { %v1412_v49 = vmul.f32 %v2507_v60, %v1410_v55 }
 0x535   :  { %v3441_v16 = vadd.f32 %v1414_v61, %v1412_v49  ;;  %v3616_v61 = vld [vmem:[#allocation6_spill] sm:$0xff] }
 0x536   :  { %v2509_v2 = vpop.eup %2508 }
 0x537   :  { %v1413_v0 = vmul.f32 %v2509_v2, %v1411_v25 }
 0x539   :  { %v3444_v59 = vadd.f32 %v1415_v58, %v1413_v0 }
 0x53b   :  { %v1418_v11 = vpack.c.bf16 %v3444_v59, %v3441_v16 }
 0x53d   :  { %2051 = vst [vmem:[%s3573_s6 + $0x20] sm:$0xff] %v1418_v11   ;;  %1462 = vmatmul.mubr.bf16.vlgmr.msra.gmra.mxu1 %v1418_v11  ;;  %2292 = vmatmul.mubr.bf16.vlgmr.msra.gmra.mxu0 %v1418_v11  ;;  %v3617_v11 = vld [vmem:[#allocation8_spill] sm:$0xff] }
 0x53e   :  { %1576 = vmatpush1.bf16.msra.mxu1 %v3285_v47  ;;  %2296 = vmatpush3.bf16.msra.mxu0 %v3291_v18 }
 0x53f   :  { %1577 = vmatprep.subr.bf16.mxu1 %v3297_v1  ;;  %2297 = vmatprep.subr.bf16.mxu0 %v3603_v56 }
 0x540   :  { %1607 = vmatprep.mubr.bf16.mxu1 %v3604_v57  ;;  %2311 = vmatprep.mubr.msk.bf16.mxu0 %vm2597_vm0, %v3603_v56 }
 0x542   :  { %1578 = vmatpush1.bf16.msra.mxu1 %v3307_v63  ;;  %2298 = vmatpush3.bf16.msra.mxu0 %v3313_v7 }
 0x543   :  { %1579 = vmatprep.subr.bf16.mxu1 %v3319_v24  ;;  %2299 = vmatprep.subr.bf16.mxu0 %v3603_v56 }
 0x546   :  { %1580 = vmatpush1.bf16.msra.mxu1 %v3326_v9  ;;  %2300 = vmatpush3.bf16.msra.mxu0 %v3332_v3 }
 0x547   :  { %1581 = vmatprep.subr.bf16.mxu1 %v3338_v26  ;;  %2301 = vmatprep.subr.bf16.mxu0 %v3603_v56 }
 0x54a   :  { %1582 = vmatpush1.bf16.msra.mxu1 %v3345_v51  ;;  %2302 = vmatpush3.bf16.msra.mxu0 %v3351_v29 }
 0x54b   :  { %1583 = vmatprep.subr.bf16.mxu1 %v3357_v31  ;;  %2303 = vmatprep.subr.bf16.mxu0 %v3603_v56 }
 0x54e   :  { %1584 = vmatpush1.bf16.msra.mxu1 %v3364_v33  ;;  %2304 = vmatpush3.bf16.msra.mxu0 %v3370_v34 }
 0x54f   :  { %1585 = vmatprep.subr.bf16.mxu1 %v3376_v35  ;;  %2305 = vmatprep.subr.bf16.mxu0 %v3603_v56 }
 0x552   :  { %1586 = vmatpush1.bf16.msra.mxu1 %v3383_v37  ;;  %2306 = vmatpush3.bf16.msra.mxu0 %v3389_v38 }
 0x553   :  { %1587 = vmatprep.subr.bf16.mxu1 %v3395_v40  ;;  %2307 = vmatprep.subr.bf16.mxu0 %v3603_v56 }
 0x556   :  { %1588 = vmatpush1.bf16.msra.mxu1 %v3402_v41  ;;  %2308 = vmatpush3.bf16.msra.mxu0 %v3408_v42 }
 0x557   :  { %1589 = vmatprep.subr.bf16.mxu1 %v3414_v43  ;;  %2309 = vmatprep.subr.bf16.mxu0 %v3603_v56 }
 0x55a   :  { %1590 = vmatpush1.bf16.msra.mxu1 %v3421_v45  ;;  %2310 = vmatpush3.bf16.msra.mxu0 %v3427_v46 }
 0x55b   :  { %1721 = vmatprep.subr.bf16.mxu1 %v3259_v28  ;;  %2315 = vmatprep.subr.bf16.mxu0 %v3603_v56  ;;  %v3615_v28 = vld [vmem:[#allocation20_spill] sm:$0xff] }
 0x5fd   :  { %v1463_v22 = vpop.f32.mrf.mxu1  ;;  %v1506_v13 = vpop.f32.mrf.mxu0 }
 0x5fe   :  { %v1520_v62 = vadd.f32 %v1463_v22, %v3058_v21  ;;  %v1548_v54 = vadd.f32 %v3093_v20, %v1506_v13 }
 0x5ff   :  { %v1465_v15 = vpop.f32.mrf.mxu1  ;;  %v2293_v10 = vpop.f32.mrf.mxu0 }
 0x600   :  { %v1968_v39 = vmul.f32 -1.442695, %v1520_v62  ;;  %v1521_v14 = vadd.f32 %v1465_v15, %v3614_v5 }
 0x601   :  { %v1467_v30 = vpop.f32.mrf.mxu1  ;;  %v1509_v19 = vpop.f32.mrf.mxu0 }
 0x602   :  { %2510 = vpow2.f32 %v1968_v39  ;;  %v1522_v4 = vadd.f32 %v1467_v30, %v3613_v17  ;;  %v1969_v32 = vmul.f32 -1.442695, %v1521_v14  ;;  %v1549_v2 = vadd.f32 %v3093_v20, %v1509_v19 }
 0x603   :  { %v2294_v8 = vpop.f32.mrf.mxu0  ;;  %v1469_v27 = vpop.f32.mrf.mxu1 }
 0x604   :  { %v1970_v36 = vmul.f32 -1.442695, %v1522_v4  ;;  %v1523_v12 = vadd.f32 %v1469_v27, %v3615_v28 }
 0x606   :  { %2512 = vpow2.f32 %v1970_v36  ;;  %v1971_v6 = vmul.f32 -1.442695, %v1523_v12  ;;  %v3545_v36 = vld [vmem:[%s3572_s5] ss:$0 sm:$0xff] }
 0x607   :  { %2514 = vpow2.f32 %v1969_v32 }
 0x608   :  { %2516 = vpow2.f32 %v1971_v6  ;;  %v3622_v6 = vld [vmem:[#allocation11_spill] sm:$0xff] }
 0x60f   :  { %v2511_v21 = vpop.eup %2510 }
 0x610   :  { %v1536_v23 = vadd.f32 1.0, %v2511_v21 }
 0x612   :  { %2518 = vrcp.f32 %v1536_v23 }
 0x613   :  { %v2513_v44 = vpop.eup %2512 }
 0x614   :  { %v1538_v48 = vadd.f32 1.0, %v2513_v44  ;;  %v2515_v50 = vpop.eup %2514 }
 0x615   :  { %v2517_v52 = vpop.eup %2516  ;;  %v1537_v53 = vadd.f32 1.0, %v2515_v50  ;;  %v3623_v50 = vld [vmem:[#allocation14_spill] sm:$0xff] }
 0x616   :  { %2520 = vrcp.f32 %v1538_v48  ;;  %v1539_v60 = vadd.f32 1.0, %v2517_v52 }
 0x617   :  { %2522 = vrcp.f32 %v1537_v53 }
 0x618   :  { %2524 = vrcp.f32 %v1539_v60 }
 0x61f   :  { %v2519_v55 = vpop.eup %2518 }
 0x620   :  { %v1550_v49 = vmul.f32 %v2519_v55, %v1548_v54 }
 0x622   :  { %v1552_v25 = vadd.f32 %v1550_v49, %v3616_v61 }
 0x623   :  { %v2521_v0 = vpop.eup %2520 }
 0x624   :  { %2526 = vtanh.f32 %v1552_v25  ;;  %v1551_v58 = vmul.f32 %v2521_v0, %v1549_v2  ;;  %v2523_v62 = vpop.eup %2522 }
 0x625   :  { %v2525_v15 = vpop.eup %2524  ;;  %v1556_v10 = vsub.f32 1.0, %v2523_v62  ;;  %v1560_v30 = vmul.f32 %v2523_v62, %v3441_v16 }
 0x626   :  { %v1553_v22 = vadd.f32 %v1551_v58, %v3617_v11  ;;  %v1557_v17 = vsub.f32 1.0, %v2525_v15  ;;  %v1561_v20 = vmul.f32 %v2525_v15, %v3444_v59 }
 0x628   :  { %2528 = vtanh.f32 %v1553_v22 }
 0x631   :  { %v2527_v39 = vpop.eup %2526 }
 0x632   :  { %v1558_v13 = vmul.f32 %v2527_v39, %v1556_v10  ;;  %v3624_v39 = vld [vmem:[#allocation25_spill] sm:$0xff] }
 0x634   :  { %v3495_v4 = vadd.f32 %v1560_v30, %v1558_v13 }
 0x635   :  { %v2529_v8 = vpop.eup %2528 }
 0x636   :  { %v1559_v5 = vmul.f32 %v2529_v8, %v1557_v17 }
 0x638   :  { %v3498_v19 = vadd.f32 %v1561_v20, %v1559_v5  ;;  %v3625_v20 = vld [vmem:[#allocation27_spill] sm:$0xff] }
 0x63a   :  { %v1564_v14 = vpack.c.bf16 %v3498_v19, %v3495_v4 }
 0x63c   :  { %2052 = vst [vmem:[%s3573_s6 + $0x28] sm:$0xff] %v1564_v14   ;;  %1608 = vmatmul.mubr.bf16.vlgmr.msra.gmra.mxu1 %v1564_v14  ;;  %2312 = vmatmul.mubr.bf16.vlgmr.msra.gmra.mxu0 %v1564_v14 }
 0x63d   :  { %1722 = vmatpush1.bf16.msra.mxu1 %v3285_v47  ;;  %2316 = vmatpush3.bf16.msra.mxu0 %v3291_v18  ;;  %v3618_v18 = vld [vmem:[#allocation21_spill] sm:$0xff] }
 0x63e   :  { %1723 = vmatprep.subr.bf16.mxu1 %v3297_v1  ;;  %2317 = vmatprep.subr.bf16.mxu0 %v3603_v56 }
 0x63f   :  { %1753 = vmatprep.mubr.bf16.mxu1 %v3604_v57  ;;  %2331 = vmatprep.mubr.msk.bf16.mxu0 %vm2597_vm0, %v3603_v56 }
 0x641   :  { %1724 = vmatpush1.bf16.msra.mxu1 %v3307_v63  ;;  %2318 = vmatpush3.bf16.msra.mxu0 %v3313_v7 }
 0x642   :  { %1725 = vmatprep.subr.bf16.mxu1 %v3319_v24  ;;  %2319 = vmatprep.subr.bf16.mxu0 %v3603_v56 }
 0x645   :  { %1726 = vmatpush1.bf16.msra.mxu1 %v3326_v9  ;;  %2320 = vmatpush3.bf16.msra.mxu0 %v3332_v3 }
 0x646   :  { %1727 = vmatprep.subr.bf16.mxu1 %v3338_v26  ;;  %2321 = vmatprep.subr.bf16.mxu0 %v3603_v56  ;;  %v3619_v26 = vld [vmem:[#allocation23_spill] sm:$0xff] }
 0x649   :  { %1728 = vmatpush1.bf16.msra.mxu1 %v3345_v51  ;;  %2322 = vmatpush3.bf16.msra.mxu0 %v3351_v29 }
 0x64a   :  { %1729 = vmatprep.subr.bf16.mxu1 %v3357_v31  ;;  %2323 = vmatprep.subr.bf16.mxu0 %v3603_v56  ;;  %v3620_v31 = vld [vmem:[#allocation22_spill] sm:$0xff] }
 0x64d   :  { %1730 = vmatpush1.bf16.msra.mxu1 %v3364_v33  ;;  %2324 = vmatpush3.bf16.msra.mxu0 %v3370_v34 }
 0x64e   :  { %1731 = vmatprep.subr.bf16.mxu1 %v3376_v35  ;;  %2325 = vmatprep.subr.bf16.mxu0 %v3603_v56  ;;  %v3621_v35 = vld [vmem:[#allocation24_spill] sm:$0xff] }
 0x651   :  { %1732 = vmatpush1.bf16.msra.mxu1 %v3383_v37  ;;  %2326 = vmatpush3.bf16.msra.mxu0 %v3389_v38 }
 0x652   :  { %1733 = vmatprep.subr.bf16.mxu1 %v3395_v40  ;;  %2327 = vmatprep.subr.bf16.mxu0 %v3603_v56 }
 0x655   :  { %1734 = vmatpush1.bf16.msra.mxu1 %v3402_v41  ;;  %2328 = vmatpush3.bf16.msra.mxu0 %v3408_v42 }
 0x656   :  { %1735 = vmatprep.subr.bf16.mxu1 %v3414_v43  ;;  %2329 = vmatprep.subr.bf16.mxu0 %v3603_v56 }
 0x659   :  { %1736 = vmatpush1.bf16.msra.mxu1 %v3421_v45  ;;  %2330 = vmatpush3.bf16.msra.mxu0 %v3427_v46 }
 0x6fc   :  { %v1609_v57 = vpop.f32.mrf.mxu1  ;;  %v1652_v47 = vpop.f32.mrf.mxu0 }
 0x6fd   :  { %v1666_v1 = vadd.f32 %v1609_v57, %v3618_v18  ;;  %v1694_v27 = vadd.f32 %v3545_v36, %v1652_v47  ;;  %v3626_v57 = vld [vmem:[#allocation26_spill] sm:$0xff] }
 0x6fe   :  { %v1611_v63 = vpop.f32.mrf.mxu1  ;;  %v2313_v7 = vpop.f32.mrf.mxu0 }
 0x6ff   :  { %v1976_v24 = vmul.f32 -1.442695, %v1666_v1  ;;  %v1667_v33 = vadd.f32 %v1611_v63, %v3620_v31  ;;  %v3627_v63 = vld [vmem:[#allocation28_spill] sm:$0xff] }
 0x700   :  { %v1613_v9 = vpop.f32.mrf.mxu1  ;;  %v1655_v3 = vpop.f32.mrf.mxu0 }
 0x701   :  { %2530 = vpow2.f32 %v1976_v24  ;;  %v1668_v51 = vadd.f32 %v1613_v9, %v3619_v26  ;;  %v1977_v38 = vmul.f32 -1.442695, %v1667_v33  ;;  %v1695_v23 = vadd.f32 %v3545_v36, %v1655_v3 }
 0x702   :  { %v2314_v29 = vpop.f32.mrf.mxu0  ;;  %v1615_v34 = vpop.f32.mrf.mxu1 }
 0x703   :  { %v1978_v56 = vmul.f32 -1.442695, %v1668_v51  ;;  %v1669_v37 = vadd.f32 %v1615_v34, %v3621_v35 }
 0x705   :  { %2532 = vpow2.f32 %v1978_v56  ;;  %v1979_v40 = vmul.f32 -1.442695, %v1669_v37 }
 0x706   :  { %2534 = vpow2.f32 %v1977_v38 }
 0x707   :  { %2536 = vpow2.f32 %v1979_v40  ;;  %v3628_v40 = vld [vmem:[#allocation10_spill] sm:$0xff] }
 0x70e   :  { %v2531_v41 = vpop.eup %2530 }
 0x70f   :  { %v1682_v42 = vadd.f32 1.0, %v2531_v41 }
 0x711   :  { %2538 = vrcp.f32 %v1682_v42 }
 0x712   :  { %v2533_v43 = vpop.eup %2532 }
 0x713   :  { %v1684_v45 = vadd.f32 1.0, %v2533_v43  ;;  %v2535_v46 = vpop.eup %2534 }
 0x714   :  { %v2537_v16 = vpop.eup %2536  ;;  %v1683_v59 = vadd.f32 1.0, %v2535_v46  ;;  %v3629_v46 = vld [vmem:[#allocation12_spill] sm:$0xff] }
 0x715   :  { %2540 = vrcp.f32 %v1684_v45  ;;  %v1685_v12 = vadd.f32 1.0, %v2537_v16 }
 0x716   :  { %2542 = vrcp.f32 %v1683_v59 }
 0x717   :  { %2544 = vrcp.f32 %v1685_v12 }
 0x71e   :  { %v2539_v28 = vpop.eup %2538 }
 0x71f   :  { %v1696_v32 = vmul.f32 %v2539_v28, %v1694_v27 }
 0x721   :  { %v1698_v21 = vadd.f32 %v1696_v32, %v3622_v6 }
 0x722   :  { %v2541_v44 = vpop.eup %2540 }
 0x723   :  { %2546 = vtanh.f32 %v1698_v21  ;;  %v1697_v48 = vmul.f32 %v2541_v44, %v1695_v23  ;;  %v2543_v53 = vpop.eup %2542 }
 0x724   :  { %v2545_v54 = vpop.eup %2544  ;;  %v1702_v55 = vsub.f32 1.0, %v2543_v53  ;;  %v1706_v61 = vmul.f32 %v2543_v53, %v3495_v4 }
 0x725   :  { %v1699_v52 = vadd.f32 %v1697_v48, %v3623_v50  ;;  %v1703_v25 = vsub.f32 1.0, %v2545_v54  ;;  %v1707_v11 = vmul.f32 %v2545_v54, %v3498_v19 }
 0x727   :  { %2548 = vtanh.f32 %v1699_v52 }
 0x730   :  { %v2547_v60 = vpop.eup %2546 }
 0x731   :  { %v1704_v49 = vmul.f32 %v2547_v60, %v1702_v55 }
 0x733   :  { %v1708_v2 = vadd.f32 %v1706_v61, %v1704_v49 }
 0x734   :  { %v2549_v0 = vpop.eup %2548 }
 0x735   :  { %v1705_v58 = vmul.f32 %v2549_v0, %v1703_v25 }
 0x737   :  { %v1709_v22 = vadd.f32 %v1707_v11, %v1705_v58 }
 0x739   :  { %v1710_v62 = vpack.c.bf16 %v1709_v22, %v1708_v2 }
 0x73b   :  { %2053 = vst [vmem:[%s3573_s6 + $0x30] sm:$0xff] %v1710_v62   ;;  %1754 = vmatmul.mubr.bf16.vlgmr.msra.gmra.mxu1 %v1710_v62  ;;  %2332 = vmatmul.mubr.bf16.vlgmr.msra.gmra.mxu0 %v1710_v62 }
 0x7fb   :  { %v1755_v15 = vpop.f32.mrf.mxu1  ;;  %v1798_v10 = vpop.f32.mrf.mxu0 }
 0x7fc   :  { %v1812_v13 = vadd.f32 %v1755_v15, %v3624_v39  ;;  %v1840_v34 = vadd.f32 %v3545_v36, %v1798_v10 }
 0x7fd   :  { %v1757_v30 = vpop.f32.mrf.mxu1  ;;  %v2333_v17 = vpop.f32.mrf.mxu0 }
 0x7fe   :  { %v1984_v4 = vmul.f32 -1.442695, %v1812_v13  ;;  %v1813_v47 = vadd.f32 %v1757_v30, %v3626_v57 }
 0x7ff   :  { %v1759_v8 = vpop.f32.mrf.mxu1  ;;  %v1801_v5 = vpop.f32.mrf.mxu0 }
 0x800   :  { %2550 = vpow2.f32 %v1984_v4  ;;  %v1814_v19 = vadd.f32 %v1759_v8, %v3625_v20  ;;  %v1985_v24 = vmul.f32 -1.442695, %v1813_v47  ;;  %v1841_v42 = vadd.f32 %v3545_v36, %v1801_v5 }
 0x801   :  { %v2334_v14 = vpop.f32.mrf.mxu0  ;;  %v1761_v1 = vpop.f32.mrf.mxu1 }
 0x802   :  { %v1986_v18 = vmul.f32 -1.442695, %v1814_v19  ;;  %v1815_v7 = vadd.f32 %v1761_v1, %v3627_v63 }
 0x804   :  { %2552 = vpow2.f32 %v1986_v18  ;;  %v1987_v9 = vmul.f32 -1.442695, %v1815_v7 }
 0x805   :  { %2554 = vpow2.f32 %v1985_v24 }
 0x806   :  { %2556 = vpow2.f32 %v1987_v9 }
 0x80d   :  { %v2551_v3 = vpop.eup %2550 }
 0x80e   :  { %v1828_v26 = vadd.f32 1.0, %v2551_v3 }
 0x810   :  { %2558 = vrcp.f32 %v1828_v26 }
 0x811   :  { %v2553_v51 = vpop.eup %2552 }
 0x812   :  { %v1830_v29 = vadd.f32 1.0, %v2553_v51  ;;  %v2555_v31 = vpop.eup %2554 }
 0x813   :  { %v2557_v33 = vpop.eup %2556  ;;  %v1829_v56 = vadd.f32 1.0, %v2555_v31 }
 0x814   :  { %2560 = vrcp.f32 %v1830_v29  ;;  %v1831_v37 = vadd.f32 1.0, %v2557_v33 }
 0x815   :  { %2562 = vrcp.f32 %v1829_v56 }
 0x816   :  { %2564 = vrcp.f32 %v1831_v37 }
 0x81d   :  { %v2559_v35 = vpop.eup %2558 }
 0x81e   :  { %v1842_v38 = vmul.f32 %v2559_v35, %v1840_v34 }
 0x820   :  { %v1844_v41 = vadd.f32 %v1842_v38, %v3628_v40 }
 0x821   :  { %v2561_v43 = vpop.eup %2560 }
 0x822   :  { %2566 = vtanh.f32 %v1844_v41  ;;  %v1843_v45 = vmul.f32 %v2561_v43, %v1841_v42  ;;  %v2563_v59 = vpop.eup %2562 }
 0x823   :  { %v2565_v27 = vpop.eup %2564  ;;  %v1848_v28 = vsub.f32 1.0, %v2563_v59  ;;  %v1852_v6 = vmul.f32 %v2563_v59, %v1708_v2 }
 0x824   :  { %v1845_v16 = vadd.f32 %v1843_v45, %v3629_v46  ;;  %v1849_v23 = vsub.f32 1.0, %v2565_v27  ;;  %v1853_v50 = vmul.f32 %v2565_v27, %v1709_v22 }
 0x826   :  { %2568 = vtanh.f32 %v1845_v16 }
 0x82f   :  { %v2567_v12 = vpop.eup %2566 }
 0x830   :  { %v1850_v32 = vmul.f32 %v2567_v12, %v1848_v28 }
 0x832   :  { %v1854_v21 = vadd.f32 %v1852_v6, %v1850_v32 }
 0x833   :  { %v2569_v44 = vpop.eup %2568 }
 0x834   :  { %v1851_v48 = vmul.f32 %v2569_v44, %v1849_v23 }
 0x836   :  { %v1855_v52 = vadd.f32 %v1853_v50, %v1851_v48 }
 0x838   :  { %v2046_v36 = vpack.c.bf16 %v1855_v52, %v1854_v21 }
 0x83a   :  { %2054 = vst [vmem:[%s3573_s6 + $0x38] sm:$0xff] %v2046_v36  }

</bundles_post_ra>
